<compile_context>
chip_gen: v7x
topology: tpu7x:2x2x1
jax: 0.10.0
libtpu: 0.0.40
codegen_flags: <defaults>
</compile_context>

<pallas_src>
import functools
import math

import jax
import jax.numpy as jnp
from jax.experimental import pallas as pl
from jax.experimental.pallas import tpu as pltpu


# ----------------------------- in-kernel math ops -----------------------------

def _erf(x):
  # Abramowitz & Stegun 7.1.26, max abs error ~1.5e-7 (f32-level accuracy).
  # TODO(synk): switch to jax.lax.erf once Mosaic guarantees a lowering for it.
  a1, a2, a3, a4, a5 = 0.254829592, -0.284496736, 1.421413741, -1.453152027, 1.061405429
  p = 0.3275911
  sgn = jnp.where(x >= 0.0, 1.0, -1.0)
  ax = jnp.abs(x)
  t = 1.0 / (1.0 + p * ax)
  poly = ((((a5 * t + a4) * t + a3) * t + a2) * t + a1) * t
  return sgn * (1.0 - poly * jnp.exp(-ax * ax))


def _gelu(x):
  # exact (erf-based) GELU, matching torch.nn.GELU() default
  return 0.5 * x * (1.0 + _erf(x * 0.7071067811865476))


def _layernorm(x, gamma, beta, red, eps=1e-5):
  # mean / variance via MXU dots against a 1/d column (keeps reductions off the XLU).
  mu = jnp.dot(x, red, preferred_element_type=jnp.float32)
  xc = x - mu
  var = jnp.dot(xc * xc, red, preferred_element_type=jnp.float32)
  return xc * jax.lax.rsqrt(var + eps) * gamma + beta


def _bmm(a, b):
  # bf16 MXU matmul, f32 accumulation; weights are pre-cast at pack time.
  return jnp.dot(a.astype(jnp.bfloat16), b, preferred_element_type=jnp.float32)


def _fmm(a, b):
  # exact f32 matmul (gathers / scatter-mean / gate broadcast).
  return jnp.dot(a, b, preferred_element_type=jnp.float32)


# ----------------------- bias / LN vector slab row indices --------------------
# Each per-layer vector lives in one row of a [_VEC_ROWS, 2d] slab (d-wide vectors
# occupy the left half of their row).

_QB, _KVB, _N1B, _NLNG, _NLNB = 0, 1, 2, 3, 4
_E1B, _ELNG, _ELNB, _E2B, _LN1G, _LN1B = 5, 6, 7, 8, 9, 10
_N2B, _LN2G, _LN2B, _G1B, _GLNG, _GLNB, _G2B = 11, 12, 13, 14, 15, 16, 17
_VEC_ROWS = 24  # padded to a multiple of 8 sublanes


# ------------------------------ fused forward kernel ---------------------------

def _pignn_kernel(h_ref, goh_ref, bohm_ref, bohnb_ref, hsum_ref, hexp_ref, glob_ref,
                  wdst_ref, wsrc_ref, wnmsg_ref, e1we_ref, e2w_ref, n2w_ref,
                  g1w_ref, g2w_ref, skipw_ref, vecs_ref,
                  out_ref,
                  h_sc, e_sc, hskip_sc, *, d, n_edges):
  l = pl.program_id(0)

  @pl.when(l == 0)
  def _init():
    h_sc[...] = h_ref[...]
    e_sc[...] = jnp.zeros_like(e_sc)
    hskip_sc[...] = jnp.zeros_like(hskip_sc)

  V = vecs_ref[0]                                   # [24, 2d] f32 bias / LN vectors
  vd = lambda i: V[i:i + 1, :d]                     # [1, d]
  v2 = lambda i: V[i:i + 1, :]                      # [1, 2d]

  red_d = jnp.full((d, 1), 1.0 / d, jnp.float32)    # LN reduction columns (MXU)
  red_2d = jnp.full((2 * d, 1), 1.0 / (2 * d), jnp.float32)

  h = h_sc[...]                                     # [N, d] layer input
  e = e_sc[...]                                     # [E, d] edge features

  # --- fused gather: one [2E,N]@[N,d] dot, split at a sublane boundary (exact f32) ---
  hg = _fmm(goh_ref[...], h)                        # [2E, d]
  h_src, h_dst = hg[:n_edges], hg[n_edges:]

  # --- merged same-LHS projections (weights concatenated at pack time) ---
  pre_dst = _bmm(h_dst, wdst_ref[0])                # [E, 5d] = [q*s | 0 | n1w_dst | e1w_dst]
  pre_src = _bmm(h_src, wsrc_ref[0])                # [E, 3d] = [k | v | e1w_src]
  q_ext = pre_dst[:, :2 * d] + v2(_QB)              # [E, 2d] = [q/sqrt(dh) | 0]
  n_dst = pre_dst[:, 2 * d:4 * d]                   # [E, 2d] node-MLP dst contribution
  e_dst = pre_dst[:, 4 * d:]                        # [E, d]  edge-MLP dst contribution
  kv = pre_src[:, :2 * d] + v2(_KVB)                # [E, 2d] = [k | v]
  e_src = pre_src[:, 2 * d:]                        # [E, d]  edge-MLP src contribution

  # --- multi-head attention per edge (head slice/concat via indicator matmuls) ---
  scores = _bmm(q_ext * kv, hsum_ref[...])          # [E, H]
  m = jnp.max(scores, axis=-1, keepdims=True)
  p = jnp.exp(scores - m)
  attn = p * pl.reciprocal(jnp.sum(p, axis=-1, keepdims=True), approx=True)
  # dropout -> identity (eval mode)
  attn_ext = _bmm(attn, hexp_ref[...])              # [E, 2d] = [0 | attn per head]

  # --- edge update: edge_mlp(cat(h_src, e, h_dst)) via split/merged weights ---
  x = e_src + e_dst + _bmm(e, e1we_ref[0]) + vd(_E1B)
  x = _gelu(_layernorm(x, vd(_ELNG), vd(_ELNB), red_d))
  x = _bmm(x, e2w_ref[0]) + vd(_E2B)
  e_sc[...] = _layernorm(e + x, vd(_LN1G), vd(_LN1B), red_d)

  # --- node update; o_proj folded into node_mlp's first linear at pack time ---
  x = _bmm(attn_ext * kv, wnmsg_ref[0]) + n_dst + v2(_N1B)        # [E, 2d]
  x = _gelu(_layernorm(x, v2(_NLNG), v2(_NLNB), red_2d))
  x = _bmm(x, n2w_ref[0]) + vd(_N2B)                              # [E, d]
  h_new = _layernorm(h + x, vd(_LN2G), vd(_LN2B), red_d)          # [N, d] (E == N)

  # --- global gating: scatter_mean + gates[batch_idx] as (weighted) one-hot dots ---
  h_global = _fmm(bohm_ref[...], h_new)             # [B, d] (1/count folded into bohm)
  g = _bmm(h_global, g1w_ref[0]) + vd(_G1B)
  g = _gelu(_layernorm(g, vd(_GLNG), vd(_GLNB), red_d))
  g = _bmm(g, g2w_ref[0]) + vd(_G2B)
  gates = jax.nn.sigmoid(g)                         # [B, d]
  h_out = h_new * _fmm(bohnb_ref[...], gates)       # [N, d]
  h_sc[...] = h_out

  # --- skip projection accumulation: sum_l h_l @ skip_w_l == skip_proj(cat) - bias ---
  hskip_sc[...] += _bmm(h_out, skipw_ref[0])

  @pl.when(l == pl.num_programs(0) - 1)
  def _finalize():
    G = glob_ref[...]                               # [3, d]: skip_b, out_ln_g, out_ln_b
    out_ref[...] = _layernorm(h_out + hskip_sc[...] + G[0:1, :],
                              G[1:2, :], G[2:3, :], red_d)


# ------------------------------ parameter init --------------------------------

def _dense(key, fan_in, fan_out):
  # mimics torch.nn.Linear default (uniform +/- 1/sqrt(fan_in)); weights stored [in, out]
  kw, kb = jax.random.split(key)
  bound = 1.0 / math.sqrt(fan_in)
  w = jax.random.uniform(kw, (fan_in, fan_out), jnp.float32, -bound, bound)
  b = jax.random.uniform(kb, (1, fan_out), jnp.float32, -bound, bound)
  return w, b


def init_params(key, d, n_layers):
  """Torch-layout parameters (nn.Linear weights stored [in_features, out_features])."""
  keys = jax.random.split(key, n_layers + 1)
  ones_d = jnp.ones((1, d), jnp.float32)
  zeros_d = jnp.zeros((1, d), jnp.float32)
  ones_2d = jnp.ones((1, 2 * d), jnp.float32)
  zeros_2d = jnp.zeros((1, 2 * d), jnp.float32)
  layers = []
  for i in range(n_layers):
    lk = jax.random.split(keys[i], 10)
    qw, qb = _dense(lk[0], d, d)
    kw_, kb_ = _dense(lk[1], d, d)
    vw, vb = _dense(lk[2], d, d)
    ow, ob = _dense(lk[3], d, d)
    e1w, e1b = _dense(lk[4], 3 * d, d)
    e2w, e2b = _dense(lk[5], d, d)
    n1w, n1b = _dense(lk[6], 2 * d, 2 * d)
    n2w, n2b = _dense(lk[7], 2 * d, d)
    g1w, g1b = _dense(lk[8], d, d)
    g2w, g2b = _dense(lk[9], d, d)
    layers.append(dict(
        qw=qw, qb=qb, kw=kw_, kb=kb_, vw=vw, vb=vb, ow=ow, ob=ob,
        e1w=e1w, e1b=e1b, e_ln_g=ones_d, e_ln_b=zeros_d, e2w=e2w, e2b=e2b,
        n1w=n1w, n1b=n1b, n_ln_g=ones_2d, n_ln_b=zeros_2d, n2w=n2w, n2b=n2b,
        g1w=g1w, g1b=g1b, g_ln_g=ones_d, g_ln_b=zeros_d, g2w=g2w, g2b=g2b,
        ln1_g=ones_d, ln1_b=zeros_d, ln2_g=ones_d, ln2_b=zeros_d))
  skip_w, skip_b = _dense(keys[-1], d * n_layers, d)
  return {"layers": layers, "skip_w": skip_w, "skip_b": skip_b,
          "out_ln_g": ones_d, "out_ln_b": zeros_d}


def pack_params(params, d, n_heads):
  """Fold / merge / stack torch-layout weights into the MXU-friendly kernel layout."""
  d_head = d // n_heads
  scale = 1.0 / math.sqrt(d_head)
  f32 = jnp.float32
  z_dd = jnp.zeros((d, d), f32)
  z_d = jnp.zeros((1, d), f32)

  acc = {k: [] for k in ("wdst", "wsrc", "wnmsg", "e1we", "e2w", "n2w",
                         "g1w", "g2w", "skipw", "vecs")}
  for li, p in enumerate(params["layers"]):
    e1w_src, e1w_e, e1w_dst = p["e1w"][:d], p["e1w"][d:2 * d], p["e1w"][2 * d:]
    n1w_msg, n1w_dst = p["n1w"][:d], p["n1w"][d:]

    qw_ext = jnp.concatenate([p["qw"] * scale, z_dd], axis=1)                 # [d, 2d]
    acc["wdst"].append(jnp.concatenate([qw_ext, n1w_dst, e1w_dst], axis=1))   # [d, 5d]
    acc["wsrc"].append(jnp.concatenate([p["kw"], p["vw"], e1w_src], axis=1))  # [d, 3d]
    # fold o_proj into node_mlp's first linear: (attn*v) @ (ow @ n1w_msg)
    acc["wnmsg"].append(jnp.concatenate(
        [jnp.zeros((d, 2 * d), f32), p["ow"] @ n1w_msg], axis=0))             # [2d, 2d]
    acc["e1we"].append(e1w_e)
    acc["e2w"].append(p["e2w"])
    acc["n2w"].append(p["n2w"])
    acc["g1w"].append(p["g1w"])
    acc["g2w"].append(p["g2w"])
    acc["skipw"].append(params["skip_w"][li * d:(li + 1) * d])

    def row_d(v):  # place a [1,d] vector in the left half of a [1,2d] slab row
      return jnp.concatenate([v, z_d], axis=1)

    rows = [
        jnp.concatenate([p["qb"] * scale, z_d], axis=1),   # _QB
        jnp.concatenate([p["kb"], p["vb"]], axis=1),       # _KVB
        p["n1b"] + p["ob"] @ n1w_msg,                      # _N1B (o_proj bias folded in)
        p["n_ln_g"], p["n_ln_b"],                          # _NLNG, _NLNB
        row_d(p["e1b"]), row_d(p["e_ln_g"]), row_d(p["e_ln_b"]), row_d(p["e2b"]),
        row_d(p["ln1_g"]), row_d(p["ln1_b"]),
        row_d(p["n2b"]), row_d(p["ln2_g"]), row_d(p["ln2_b"]),
        row_d(p["g1b"]), row_d(p["g_ln_g"]), row_d(p["g_ln_b"]), row_d(p["g2b"]),
    ]
    slab = jnp.concatenate(rows, axis=0)                   # [18, 2d]
    slab = jnp.concatenate(
        [slab, jnp.zeros((_VEC_ROWS - slab.shape[0], 2 * d), f32)], axis=0)
    acc["vecs"].append(slab)

  packed = {k: jnp.stack(v, axis=0) for k, v in acc.items()}
  for k in ("wdst", "wsrc", "wnmsg", "e1we", "e2w", "n2w", "g1w", "g2w", "skipw"):
    packed[k] = packed[k].astype(jnp.bfloat16)             # bf16 MXU operands
  return packed


def _head_matrices(d, n_heads):
  head_id = jnp.arange(d) // (d // n_heads)                                            # [d]
  sum_top = (head_id[:, None] == jnp.arange(n_heads)[None, :]).astype(jnp.float32)     # [d, H]
  head_sum = jnp.concatenate([sum_top, jnp.zeros((d, n_heads), jnp.float32)], axis=0)  # [2d, H]
  head_exp = jnp.concatenate([jnp.zeros((n_heads, d), jnp.float32), sum_top.T], axis=1)  # [H, 2d]
  return head_sum.astype(jnp.bfloat16), head_exp.astype(jnp.bfloat16)


# ------------------------------ full forward -----------------------------------

def multi_layer_pignn(h, edge_index, batch_idx, params, n_heads, n_batches):
  src, dst = edge_index[0], edge_index[1]
  n_nodes, d = h.shape
  n_edges = src.shape[0]
  n_layers = len(params["layers"])
  # TODO(synk): reference residual `h + node_mlp(...)` mixes edge-indexed rows into node
  # features; it only matches PyTorch when n_edges == n_nodes with identity ordering.
  assert n_edges == n_nodes, "reference forward requires n_edges == n_nodes"

  f32 = jnp.float32
  node_ids = jnp.arange(n_nodes)
  src_oh = (src[:, None] == node_ids[None, :]).astype(f32)               # [E, N]
  dst_oh = (dst[:, None] == node_ids[None, :]).astype(f32)               # [E, N]
  gather_oh = jnp.concatenate([src_oh, dst_oh], axis=0)                  # [2E, N]

  boh_nb = (batch_idx[:, None] == jnp.arange(n_batches)[None, :]).astype(f32)  # [N, B]
  counts = jnp.sum(boh_nb, axis=0)                                       # [B]
  boh_mean = boh_nb.T / jnp.maximum(counts, 1.0)[:, None]                # [B, N] scatter-mean weights

  head_sum, head_exp = _head_matrices(d, n_heads)
  glob = jnp.concatenate(
      [params["skip_b"], params["out_ln_g"], params["out_ln_b"]], axis=0)  # [3, d]

  packed = pack_params(params, d, n_heads)

  globals_ = [h, gather_oh, boh_mean, boh_nb, head_sum, head_exp, glob]
  per_layer = [packed[k] for k in ("wdst", "wsrc", "wnmsg", "e1we", "e2w", "n2w",
                                   "g1w", "g2w", "skipw", "vecs")]

  def full_spec(a):      # whole array, resident across all layer steps
    return pl.BlockSpec(a.shape, lambda l: (0,) * a.ndim)

  def layer_spec(a):     # one layer slice per grid step (double-buffered by Pallas)
    return pl.BlockSpec((1,) + a.shape[1:], lambda l: (l, 0, 0))

  kernel = functools.partial(_pignn_kernel, d=d, n_edges=n_edges)
  return pl.pallas_call(
      kernel,
      out_shape=jax.ShapeDtypeStruct((n_nodes, d), f32),
      grid=(n_layers,),
      in_specs=[full_spec(a) for a in globals_] + [layer_spec(a) for a in per_layer],
      out_specs=pl.BlockSpec((n_nodes, d), lambda l: (0, 0)),
      scratch_shapes=[pltpu.VMEM((n_nodes, d), f32),    # h accumulator
                      pltpu.VMEM((n_edges, d), f32),    # e accumulator
                      pltpu.VMEM((n_nodes, d), f32)],   # skip-projection accumulator
      compiler_params=pltpu.CompilerParams(
          dimension_semantics=("arbitrary",),
          vmem_limit_bytes=32 * 1024 * 1024),
  )(*(globals_ + per_layer))


# ----------------------------------- main ---------------------------------------

if __name__ == "__main__":
  latent_dim = 32
  n_layers = 2
  n_heads = 4
  n_neighbors = 8   # stored by the reference module but unused in forward
  n_nodes = 16
  n_edges = 16      # must equal n_nodes (see semantics note above)
  n_batches = 2

  key = jax.random.PRNGKey(0)
  k_h, k_src, k_dst, k_p = jax.random.split(key, 4)

  h = jax.random.normal(k_h, (n_nodes, latent_dim), jnp.float32)
  src = jax.random.randint(k_src, (n_edges,), 0, n_nodes, dtype=jnp.int32)
  dst = jax.random.randint(k_dst, (n_edges,), 0, n_nodes, dtype=jnp.int32)
  edge_index = jnp.stack([src, dst], axis=0)
  batch_idx = jnp.concatenate([jnp.zeros(n_nodes // 2, jnp.int32),
                               jnp.ones(n_nodes - n_nodes // 2, jnp.int32)])

  params = init_params(k_p, latent_dim, n_layers)

  out = multi_layer_pignn(h, edge_index, batch_idx, params, n_heads, n_batches)
  jax.block_until_ready(out)
  assert out.shape == (n_nodes, latent_dim) and out.dtype == jnp.float32
  assert bool(jnp.all(jnp.isfinite(out)))
  print("KERNEL_OK")
</pallas_src>

<mosaic_0001>
module attributes {stable_mosaic.version = 11 : i64} {
  func.func @_pignn_kernel(%arg0: i32, %arg1: memref<16x32xf32, #tpu.memory_space<vmem>>, %arg2: memref<32x16xf32, #tpu.memory_space<vmem>>, %arg3: memref<2x16xf32, #tpu.memory_space<vmem>>, %arg4: memref<16x2xf32, #tpu.memory_space<vmem>>, %arg5: memref<64x4xbf16, #tpu.memory_space<vmem>>, %arg6: memref<4x64xbf16, #tpu.memory_space<vmem>>, %arg7: memref<3x32xf32, #tpu.memory_space<vmem>>, %arg8: memref<1x32x160xbf16, #tpu.memory_space<vmem>>, %arg9: memref<1x32x96xbf16, #tpu.memory_space<vmem>>, %arg10: memref<1x64x64xbf16, #tpu.memory_space<vmem>>, %arg11: memref<1x32x32xbf16, #tpu.memory_space<vmem>>, %arg12: memref<1x32x32xbf16, #tpu.memory_space<vmem>>, %arg13: memref<1x64x32xbf16, #tpu.memory_space<vmem>>, %arg14: memref<1x32x32xbf16, #tpu.memory_space<vmem>>, %arg15: memref<1x32x32xbf16, #tpu.memory_space<vmem>>, %arg16: memref<1x32x32xbf16, #tpu.memory_space<vmem>>, %arg17: memref<1x24x64xf32, #tpu.memory_space<vmem>>, %arg18: memref<16x32xf32, #tpu.memory_space<vmem>>, %arg19: memref<16x32xf32, #tpu.memory_space<vmem>>, %arg20: memref<16x32xf32, #tpu.memory_space<vmem>>, %arg21: memref<16x32xf32, #tpu.memory_space<vmem>>) attributes {dimension_semantics = [#tpu.dimension_semantics<arbitrary>], iteration_bounds = array<i64: 2>, scalar_prefetch = 0 : i64, scratch_operands = 3 : i64, tpu.core_type = #tpu.core_type<tc>, window_params = [{pipeline_mode = #tpu.pipeline_mode<synchronous>, transform_indices = @transform_0, window_bounds = array<i64: 16, 32>}, {pipeline_mode = #tpu.pipeline_mode<synchronous>, transform_indices = @transform_1, window_bounds = array<i64: 32, 16>}, {pipeline_mode = #tpu.pipeline_mode<synchronous>, transform_indices = @transform_2, window_bounds = array<i64: 2, 16>}, {pipeline_mode = #tpu.pipeline_mode<synchronous>, transform_indices = @transform_3, window_bounds = array<i64: 16, 2>}, {pipeline_mode = #tpu.pipeline_mode<synchronous>, transform_indices = @transform_4, window_bounds = array<i64: 64, 4>}, {pipeline_mode = #tpu.pipeline_mode<synchronous>, transform_indices = @transform_5, window_bounds = array<i64: 4, 64>}, {pipeline_mode = #tpu.pipeline_mode<synchronous>, transform_indices = @transform_6, window_bounds = array<i64: 3, 32>}, {transform_indices = @transform_7, window_bounds = array<i64: 1, 32, 160>}, {transform_indices = @transform_8, window_bounds = array<i64: 1, 32, 96>}, {transform_indices = @transform_9, window_bounds = array<i64: 1, 64, 64>}, {transform_indices = @transform_10, window_bounds = array<i64: 1, 32, 32>}, {transform_indices = @transform_11, window_bounds = array<i64: 1, 32, 32>}, {transform_indices = @transform_12, window_bounds = array<i64: 1, 64, 32>}, {transform_indices = @transform_13, window_bounds = array<i64: 1, 32, 32>}, {transform_indices = @transform_14, window_bounds = array<i64: 1, 32, 32>}, {transform_indices = @transform_15, window_bounds = array<i64: 1, 32, 32>}, {transform_indices = @transform_16, window_bounds = array<i64: 1, 24, 64>}, {pipeline_mode = #tpu.pipeline_mode<synchronous>, transform_indices = @transform_17, window_bounds = array<i64: 16, 32>}]} {
    %c0_i32 = arith.constant 0 : i32
    %0 = arith.cmpi eq, %arg0, %c0_i32 : i32
    %1 = arith.extui %0 : i1 to i32
    %c0_i32_0 = arith.constant 0 : i32
    %2 = arith.cmpi ne, %1, %c0_i32_0 : i32
    scf.if %2 {
      %c0_134 = arith.constant 0 : index
      %c0_135 = arith.constant 0 : index
      %322 = vector.load %arg1[%c0_134, %c0_135] : memref<16x32xf32, #tpu.memory_space<vmem>>, vector<16x32xf32>
      %c0_136 = arith.constant 0 : index
      %c0_137 = arith.constant 0 : index
      %323 = vector.load %arg19[%c0_136, %c0_137] : memref<16x32xf32, #tpu.memory_space<vmem>>, vector<16x32xf32>
      tpu.vector_store %arg19[%c0_136, %c0_137], %322 {strides = array<i32>} : memref<16x32xf32, #tpu.memory_space<vmem>>, vector<16x32xf32>,
      %cst_138 = arith.constant 0.000000e+00 : f32
      %324 = vector.broadcast %cst_138 : f32 to vector<16x32xf32>
      %c0_139 = arith.constant 0 : index
      %c0_140 = arith.constant 0 : index
      %325 = vector.load %arg20[%c0_139, %c0_140] : memref<16x32xf32, #tpu.memory_space<vmem>>, vector<16x32xf32>
      tpu.vector_store %arg20[%c0_139, %c0_140], %324 {strides = array<i32>} : memref<16x32xf32, #tpu.memory_space<vmem>>, vector<16x32xf32>,
      %cst_141 = arith.constant 0.000000e+00 : f32
      %326 = vector.broadcast %cst_141 : f32 to vector<16x32xf32>
      %c0_142 = arith.constant 0 : index
      %c0_143 = arith.constant 0 : index
      %327 = vector.load %arg21[%c0_142, %c0_143] : memref<16x32xf32, #tpu.memory_space<vmem>>, vector<16x32xf32>
      tpu.vector_store %arg21[%c0_142, %c0_143], %326 {strides = array<i32>} : memref<16x32xf32, #tpu.memory_space<vmem>>, vector<16x32xf32>,
    } else {
    }
    %c0 = arith.constant 0 : index
    %c0_1 = arith.constant 0 : index
    %c0_2 = arith.constant 0 : index
    %3 = vector.load %arg17[%c0, %c0_1, %c0_2] : memref<1x24x64xf32, #tpu.memory_space<vmem>>, vector<1x24x64xf32>
    %4 = vector.shape_cast %3 : vector<1x24x64xf32> to vector<24x64xf32>
    %cst = arith.constant 3.125000e-02 : f32
    %5 = vector.broadcast %cst : f32 to vector<32x1xf32>
    %cst_3 = arith.constant 1.562500e-02 : f32
    %6 = vector.broadcast %cst_3 : f32 to vector<64x1xf32>
    %c0_4 = arith.constant 0 : index
    %c0_5 = arith.constant 0 : index
    %7 = vector.load %arg19[%c0_4, %c0_5] : memref<16x32xf32, #tpu.memory_space<vmem>>, vector<16x32xf32>
    %c0_6 = arith.constant 0 : index
    %c0_7 = arith.constant 0 : index
    %8 = vector.load %arg20[%c0_6, %c0_7] : memref<16x32xf32, #tpu.memory_space<vmem>>, vector<16x32xf32>
    %c0_8 = arith.constant 0 : index
    %c0_9 = arith.constant 0 : index
    %9 = vector.load %arg2[%c0_8, %c0_9] : memref<32x16xf32, #tpu.memory_space<vmem>>, vector<32x16xf32>
    %cst_10 = arith.constant dense<0.000000e+00> : vector<32x32xf32>
    %10 = tpu.matmul %9, %7, %cst_10 {dimension_numbers = #tpu.dot_dimension_numbers<[1], [0], [0], [1], [0, 0, 1, 1], [], []>} : vector<32x16xf32>, vector<16x32xf32>, vector<32x32xf32> -> vector<32x32xf32>
    %11 = vector.extract_strided_slice %10 {offsets = [0, 0], sizes = [16, 32], strides = [1, 1]} : vector<32x32xf32> to vector<16x32xf32>
    %12 = vector.extract_strided_slice %10 {offsets = [16, 0], sizes = [16, 32], strides = [1, 1]} : vector<32x32xf32> to vector<16x32xf32>
    %c0_11 = arith.constant 0 : index
    %c0_12 = arith.constant 0 : index
    %c0_13 = arith.constant 0 : index
    %13 = vector.load %arg8[%c0_11, %c0_12, %c0_13] : memref<1x32x160xbf16, #tpu.memory_space<vmem>>, vector<1x32x160xbf16>
    %14 = vector.shape_cast %13 : vector<1x32x160xbf16> to vector<32x160xbf16>
    %15 = arith.truncf %12 : vector<16x32xf32> to vector<16x32xbf16>
    %cst_14 = arith.constant dense<0.000000e+00> : vector<16x160xf32>
    %16 = tpu.matmul %15, %14, %cst_14 {dimension_numbers = #tpu.dot_dimension_numbers<[1], [0], [0], [1], [0, 0, 1, 1], [], []>} : vector<16x32xbf16>, vector<32x160xbf16>, vector<16x160xf32> -> vector<16x160xf32>
    %c0_15 = arith.constant 0 : index
    %c0_16 = arith.constant 0 : index
    %c0_17 = arith.constant 0 : index
    %17 = vector.load %arg9[%c0_15, %c0_16, %c0_17] : memref<1x32x96xbf16, #tpu.memory_space<vmem>>, vector<1x32x96xbf16>
    %18 = vector.shape_cast %17 : vector<1x32x96xbf16> to vector<32x96xbf16>
    %19 = arith.truncf %11 : vector<16x32xf32> to vector<16x32xbf16>
    %cst_18 = arith.constant dense<0.000000e+00> : vector<16x96xf32>
    %20 = tpu.matmul %19, %18, %cst_18 {dimension_numbers = #tpu.dot_dimension_numbers<[1], [0], [0], [1], [0, 0, 1, 1], [], []>} : vector<16x32xbf16>, vector<32x96xbf16>, vector<16x96xf32> -> vector<16x96xf32>
    %21 = vector.extract_strided_slice %16 {offsets = [0, 0], sizes = [16, 64], strides = [1, 1]} : vector<16x160xf32> to vector<16x64xf32>
    %22 = vector.extract_strided_slice %4 {offsets = [0, 0], sizes = [1, 64], strides = [1, 1]} : vector<24x64xf32> to vector<1x64xf32>
    %23 = vector.broadcast %22 : vector<1x64xf32> to vector<16x64xf32>
    %24 = arith.addf %21, %23 : vector<16x64xf32>
    %25 = vector.extract_strided_slice %16 {offsets = [0, 64], sizes = [16, 64], strides = [1, 1]} : vector<16x160xf32> to vector<16x64xf32>
    %26 = vector.extract_strided_slice %16 {offsets = [0, 128], sizes = [16, 32], strides = [1, 1]} : vector<16x160xf32> to vector<16x32xf32>
    %27 = vector.extract_strided_slice %20 {offsets = [0, 0], sizes = [16, 64], strides = [1, 1]} : vector<16x96xf32> to vector<16x64xf32>
    %28 = vector.extract_strided_slice %4 {offsets = [1, 0], sizes = [1, 64], strides = [1, 1]} : vector<24x64xf32> to vector<1x64xf32>
    %29 = vector.broadcast %28 : vector<1x64xf32> to vector<16x64xf32>
    %30 = arith.addf %27, %29 : vector<16x64xf32>
    %31 = vector.extract_strided_slice %20 {offsets = [0, 64], sizes = [16, 32], strides = [1, 1]} : vector<16x96xf32> to vector<16x32xf32>
    %32 = arith.mulf %24, %30 : vector<16x64xf32>
    %c0_19 = arith.constant 0 : index
    %c0_20 = arith.constant 0 : index
    %33 = vector.load %arg5[%c0_19, %c0_20] : memref<64x4xbf16, #tpu.memory_space<vmem>>, vector<64x4xbf16>
    %34 = arith.truncf %32 : vector<16x64xf32> to vector<16x64xbf16>
    %cst_21 = arith.constant dense<0.000000e+00> : vector<16x4xf32>
    %35 = tpu.matmul %34, %33, %cst_21 {dimension_numbers = #tpu.dot_dimension_numbers<[1], [0], [0], [1], [0, 0, 1, 1], [], []>} : vector<16x64xbf16>, vector<64x4xbf16>, vector<16x4xf32> -> vector<16x4xf32>
    %cst_22 = arith.constant dense<0xFF800000> : vector<16xf32>
    %36 = vector.multi_reduction <maximumf>, %35, %cst_22 [1] : vector<16x4xf32> to vector<16xf32>
    %37 = vector.shape_cast %36 : vector<16xf32> to vector<16x1xf32>
    %38 = vector.broadcast %37 : vector<16x1xf32> to vector<16x4xf32>
    %39 = arith.subf %35, %38 : vector<16x4xf32>
    %40 = math.exp %39 : vector<16x4xf32>
    %cst_23 = arith.constant dense<0.000000e+00> : vector<16xf32>
    %41 = vector.multi_reduction <add>, %40, %cst_23 [1] : vector<16x4xf32> to vector<16xf32>
    %42 = vector.shape_cast %41 : vector<16xf32> to vector<16x1xf32>
    %43 = tpu.reciprocal %42 {approx = true} : vector<16x1xf32> -> vector<16x1xf32>
    %44 = vector.broadcast %43 : vector<16x1xf32> to vector<16x4xf32>
    %45 = arith.mulf %40, %44 : vector<16x4xf32>
    %c0_24 = arith.constant 0 : index
    %c0_25 = arith.constant 0 : index
    %46 = vector.load %arg6[%c0_24, %c0_25] : memref<4x64xbf16, #tpu.memory_space<vmem>>, vector<4x64xbf16>
    %47 = arith.truncf %45 : vector<16x4xf32> to vector<16x4xbf16>
    %cst_26 = arith.constant dense<0.000000e+00> : vector<16x64xf32>
    %48 = tpu.matmul %47, %46, %cst_26 {dimension_numbers = #tpu.dot_dimension_numbers<[1], [0], [0], [1], [0, 0, 1, 1], [], []>} : vector<16x4xbf16>, vector<4x64xbf16>, vector<16x64xf32> -> vector<16x64xf32>
    %49 = arith.addf %31, %26 : vector<16x32xf32>
    %c0_27 = arith.constant 0 : index
    %c0_28 = arith.constant 0 : index
    %c0_29 = arith.constant 0 : index
    %50 = vector.load %arg11[%c0_27, %c0_28, %c0_29] : memref<1x32x32xbf16, #tpu.memory_space<vmem>>, vector<1x32x32xbf16>
    %51 = vector.shape_cast %50 : vector<1x32x32xbf16> to vector<32x32xbf16>
    %52 = arith.truncf %8 : vector<16x32xf32> to vector<16x32xbf16>
    %cst_30 = arith.constant dense<0.000000e+00> : vector<16x32xf32>
    %53 = tpu.matmul %52, %51, %cst_30 {dimension_numbers = #tpu.dot_dimension_numbers<[1], [0], [0], [1], [0, 0, 1, 1], [], []>} : vector<16x32xbf16>, vector<32x32xbf16>, vector<16x32xf32> -> vector<16x32xf32>
    %54 = arith.addf %49, %53 : vector<16x32xf32>
    %55 = vector.extract_strided_slice %4 {offsets = [5, 0], sizes = [1, 32], strides = [1, 1]} : vector<24x64xf32> to vector<1x32xf32>
    %56 = vector.broadcast %55 : vector<1x32xf32> to vector<16x32xf32>
    %57 = arith.addf %54, %56 : vector<16x32xf32>
    %58 = vector.extract_strided_slice %4 {offsets = [6, 0], sizes = [1, 32], strides = [1, 1]} : vector<24x64xf32> to vector<1x32xf32>
    %59 = vector.extract_strided_slice %4 {offsets = [7, 0], sizes = [1, 32], strides = [1, 1]} : vector<24x64xf32> to vector<1x32xf32>
    %cst_31 = arith.constant dense<0.000000e+00> : vector<16x1xf32>
    %60 = tpu.matmul %57, %5, %cst_31 {dimension_numbers = #tpu.dot_dimension_numbers<[1], [0], [0], [1], [0, 0, 1, 1], [], []>} : vector<16x32xf32>, vector<32x1xf32>, vector<16x1xf32> -> vector<16x1xf32>
    %61 = vector.broadcast %60 : vector<16x1xf32> to vector<16x32xf32>
    %62 = arith.subf %57, %61 : vector<16x32xf32>
    %63 = arith.mulf %62, %62 : vector<16x32xf32>
    %cst_32 = arith.constant dense<0.000000e+00> : vector<16x1xf32>
    %64 = tpu.matmul %63, %5, %cst_32 {dimension_numbers = #tpu.dot_dimension_numbers<[1], [0], [0], [1], [0, 0, 1, 1], [], []>} : vector<16x32xf32>, vector<32x1xf32>, vector<16x1xf32> -> vector<16x1xf32>
    %cst_33 = arith.constant 9.99999974E-6 : f32
    %65 = vector.broadcast %cst_33 : f32 to vector<16x1xf32>
    %66 = arith.addf %64, %65 : vector<16x1xf32>
    %67 = math.rsqrt %66 : vector<16x1xf32>
    %68 = vector.broadcast %67 : vector<16x1xf32> to vector<16x32xf32>
    %69 = arith.mulf %62, %68 : vector<16x32xf32>
    %70 = vector.broadcast %58 : vector<1x32xf32> to vector<16x32xf32>
    %71 = arith.mulf %69, %70 : vector<16x32xf32>
    %72 = vector.broadcast %59 : vector<1x32xf32> to vector<16x32xf32>
    %73 = arith.addf %71, %72 : vector<16x32xf32>
    %cst_34 = arith.constant 5.000000e-01 : f32
    %74 = vector.broadcast %cst_34 : f32 to vector<16x32xf32>
    %75 = arith.mulf %74, %73 : vector<16x32xf32>
    %cst_35 = arith.constant 0.707106769 : f32
    %76 = vector.broadcast %cst_35 : f32 to vector<16x32xf32>
    %77 = arith.mulf %73, %76 : vector<16x32xf32>
    %cst_36 = arith.constant 0.000000e+00 : f32
    %78 = vector.broadcast %cst_36 : f32 to vector<16x32xf32>
    %79 = arith.cmpf oge, %77, %78 : vector<16x32xf32>
    %cst_37 = arith.constant 1.000000e+00 : f32
    %cst_38 = arith.constant -1.000000e+00 : f32
    %80 = vector.broadcast %cst_37 : f32 to vector<16x32xf32>
    %81 = vector.broadcast %cst_38 : f32 to vector<16x32xf32>
    %82 = arith.select %79, %80, %81 : vector<16x32xi1>, vector<16x32xf32>
    %83 = math.absf %77 : vector<16x32xf32>
    %cst_39 = arith.constant 0.327591091 : f32
    %84 = vector.broadcast %cst_39 : f32 to vector<16x32xf32>
    %85 = arith.mulf %84, %83 : vector<16x32xf32>
    %cst_40 = arith.constant 1.000000e+00 : f32
    %86 = vector.broadcast %cst_40 : f32 to vector<16x32xf32>
    %87 = arith.addf %86, %85 : vector<16x32xf32>
    %cst_41 = arith.constant 1.000000e+00 : f32
    %88 = vector.broadcast %cst_41 : f32 to vector<16x32xf32>
    %89 = arith.divf %88, %87 : vector<16x32xf32>
    %cst_42 = arith.constant 1.06140542 : f32
    %90 = vector.broadcast %cst_42 : f32 to vector<16x32xf32>
    %91 = arith.mulf %90, %89 : vector<16x32xf32>
    %cst_43 = arith.constant -1.45315206 : f32
    %92 = vector.broadcast %cst_43 : f32 to vector<16x32xf32>
    %93 = arith.addf %91, %92 : vector<16x32xf32>
    %94 = arith.mulf %93, %89 : vector<16x32xf32>
    %cst_44 = arith.constant 1.42141378 : f32
    %95 = vector.broadcast %cst_44 : f32 to vector<16x32xf32>
    %96 = arith.addf %94, %95 : vector<16x32xf32>
    %97 = arith.mulf %96, %89 : vector<16x32xf32>
    %cst_45 = arith.constant -0.284496725 : f32
    %98 = vector.broadcast %cst_45 : f32 to vector<16x32xf32>
    %99 = arith.addf %97, %98 : vector<16x32xf32>
    %100 = arith.mulf %99, %89 : vector<16x32xf32>
    %cst_46 = arith.constant 0.254829586 : f32
    %101 = vector.broadcast %cst_46 : f32 to vector<16x32xf32>
    %102 = arith.addf %100, %101 : vector<16x32xf32>
    %103 = arith.mulf %102, %89 : vector<16x32xf32>
    %cst_47 = arith.constant 0.000000e+00 : f32
    %104 = vector.broadcast %cst_47 : f32 to vector<16x32xf32>
    %105 = arith.subf %104, %83 : vector<16x32xf32>
    %106 = arith.mulf %105, %83 : vector<16x32xf32>
    %107 = math.exp %106 : vector<16x32xf32>
    %108 = arith.mulf %103, %107 : vector<16x32xf32>
    %cst_48 = arith.constant 1.000000e+00 : f32
    %109 = vector.broadcast %cst_48 : f32 to vector<16x32xf32>
    %110 = arith.subf %109, %108 : vector<16x32xf32>
    %111 = arith.mulf %82, %110 : vector<16x32xf32>
    %cst_49 = arith.constant 1.000000e+00 : f32
    %112 = vector.broadcast %cst_49 : f32 to vector<16x32xf32>
    %113 = arith.addf %112, %111 : vector<16x32xf32>
    %114 = arith.mulf %75, %113 : vector<16x32xf32>
    %c0_50 = arith.constant 0 : index
    %c0_51 = arith.constant 0 : index
    %c0_52 = arith.constant 0 : index
    %115 = vector.load %arg12[%c0_50, %c0_51, %c0_52] : memref<1x32x32xbf16, #tpu.memory_space<vmem>>, vector<1x32x32xbf16>
    %116 = vector.shape_cast %115 : vector<1x32x32xbf16> to vector<32x32xbf16>
    %117 = arith.truncf %114 : vector<16x32xf32> to vector<16x32xbf16>
    %cst_53 = arith.constant dense<0.000000e+00> : vector<16x32xf32>
    %118 = tpu.matmul %117, %116, %cst_53 {dimension_numbers = #tpu.dot_dimension_numbers<[1], [0], [0], [1], [0, 0, 1, 1], [], []>} : vector<16x32xbf16>, vector<32x32xbf16>, vector<16x32xf32> -> vector<16x32xf32>
    %119 = vector.extract_strided_slice %4 {offsets = [8, 0], sizes = [1, 32], strides = [1, 1]} : vector<24x64xf32> to vector<1x32xf32>
    %120 = vector.broadcast %119 : vector<1x32xf32> to vector<16x32xf32>
    %121 = arith.addf %118, %120 : vector<16x32xf32>
    %122 = arith.addf %8, %121 : vector<16x32xf32>
    %123 = vector.extract_strided_slice %4 {offsets = [9, 0], sizes = [1, 32], strides = [1, 1]} : vector<24x64xf32> to vector<1x32xf32>
    %124 = vector.extract_strided_slice %4 {offsets = [10, 0], sizes = [1, 32], strides = [1, 1]} : vector<24x64xf32> to vector<1x32xf32>
    %cst_54 = arith.constant dense<0.000000e+00> : vector<16x1xf32>
    %125 = tpu.matmul %122, %5, %cst_54 {dimension_numbers = #tpu.dot_dimension_numbers<[1], [0], [0], [1], [0, 0, 1, 1], [], []>} : vector<16x32xf32>, vector<32x1xf32>, vector<16x1xf32> -> vector<16x1xf32>
    %126 = vector.broadcast %125 : vector<16x1xf32> to vector<16x32xf32>
    %127 = arith.subf %122, %126 : vector<16x32xf32>
    %128 = arith.mulf %127, %127 : vector<16x32xf32>
    %cst_55 = arith.constant dense<0.000000e+00> : vector<16x1xf32>
    %129 = tpu.matmul %128, %5, %cst_55 {dimension_numbers = #tpu.dot_dimension_numbers<[1], [0], [0], [1], [0, 0, 1, 1], [], []>} : vector<16x32xf32>, vector<32x1xf32>, vector<16x1xf32> -> vector<16x1xf32>
    %cst_56 = arith.constant 9.99999974E-6 : f32
    %130 = vector.broadcast %cst_56 : f32 to vector<16x1xf32>
    %131 = arith.addf %129, %130 : vector<16x1xf32>
    %132 = math.rsqrt %131 : vector<16x1xf32>
    %133 = vector.broadcast %132 : vector<16x1xf32> to vector<16x32xf32>
    %134 = arith.mulf %127, %133 : vector<16x32xf32>
    %135 = vector.broadcast %123 : vector<1x32xf32> to vector<16x32xf32>
    %136 = arith.mulf %134, %135 : vector<16x32xf32>
    %137 = vector.broadcast %124 : vector<1x32xf32> to vector<16x32xf32>
    %138 = arith.addf %136, %137 : vector<16x32xf32>
    %c0_57 = arith.constant 0 : index
    %c0_58 = arith.constant 0 : index
    %139 = vector.load %arg20[%c0_57, %c0_58] : memref<16x32xf32, #tpu.memory_space<vmem>>, vector<16x32xf32>
    tpu.vector_store %arg20[%c0_57, %c0_58], %138 {strides = array<i32>} : memref<16x32xf32, #tpu.memory_space<vmem>>, vector<16x32xf32>,
    %140 = arith.mulf %48, %30 : vector<16x64xf32>
    %c0_59 = arith.constant 0 : index
    %c0_60 = arith.constant 0 : index
    %c0_61 = arith.constant 0 : index
    %141 = vector.load %arg10[%c0_59, %c0_60, %c0_61] : memref<1x64x64xbf16, #tpu.memory_space<vmem>>, vector<1x64x64xbf16>
    %142 = vector.shape_cast %141 : vector<1x64x64xbf16> to vector<64x64xbf16>
    %143 = arith.truncf %140 : vector<16x64xf32> to vector<16x64xbf16>
    %cst_62 = arith.constant dense<0.000000e+00> : vector<16x64xf32>
    %144 = tpu.matmul %143, %142, %cst_62 {dimension_numbers = #tpu.dot_dimension_numbers<[1], [0], [0], [1], [0, 0, 1, 1], [], []>} : vector<16x64xbf16>, vector<64x64xbf16>, vector<16x64xf32> -> vector<16x64xf32>
    %145 = arith.addf %144, %25 : vector<16x64xf32>
    %146 = vector.extract_strided_slice %4 {offsets = [2, 0], sizes = [1, 64], strides = [1, 1]} : vector<24x64xf32> to vector<1x64xf32>
    %147 = vector.broadcast %146 : vector<1x64xf32> to vector<16x64xf32>
    %148 = arith.addf %145, %147 : vector<16x64xf32>
    %149 = vector.extract_strided_slice %4 {offsets = [3, 0], sizes = [1, 64], strides = [1, 1]} : vector<24x64xf32> to vector<1x64xf32>
    %150 = vector.extract_strided_slice %4 {offsets = [4, 0], sizes = [1, 64], strides = [1, 1]} : vector<24x64xf32> to vector<1x64xf32>
    %cst_63 = arith.constant dense<0.000000e+00> : vector<16x1xf32>
    %151 = tpu.matmul %148, %6, %cst_63 {dimension_numbers = #tpu.dot_dimension_numbers<[1], [0], [0], [1], [0, 0, 1, 1], [], []>} : vector<16x64xf32>, vector<64x1xf32>, vector<16x1xf32> -> vector<16x1xf32>
    %152 = vector.broadcast %151 : vector<16x1xf32> to vector<16x64xf32>
    %153 = arith.subf %148, %152 : vector<16x64xf32>
    %154 = arith.mulf %153, %153 : vector<16x64xf32>
    %cst_64 = arith.constant dense<0.000000e+00> : vector<16x1xf32>
    %155 = tpu.matmul %154, %6, %cst_64 {dimension_numbers = #tpu.dot_dimension_numbers<[1], [0], [0], [1], [0, 0, 1, 1], [], []>} : vector<16x64xf32>, vector<64x1xf32>, vector<16x1xf32> -> vector<16x1xf32>
    %cst_65 = arith.constant 9.99999974E-6 : f32
    %156 = vector.broadcast %cst_65 : f32 to vector<16x1xf32>
    %157 = arith.addf %155, %156 : vector<16x1xf32>
    %158 = math.rsqrt %157 : vector<16x1xf32>
    %159 = vector.broadcast %158 : vector<16x1xf32> to vector<16x64xf32>
    %160 = arith.mulf %153, %159 : vector<16x64xf32>
    %161 = vector.broadcast %149 : vector<1x64xf32> to vector<16x64xf32>
    %162 = arith.mulf %160, %161 : vector<16x64xf32>
    %163 = vector.broadcast %150 : vector<1x64xf32> to vector<16x64xf32>
    %164 = arith.addf %162, %163 : vector<16x64xf32>
    %cst_66 = arith.constant 5.000000e-01 : f32
    %165 = vector.broadcast %cst_66 : f32 to vector<16x64xf32>
    %166 = arith.mulf %165, %164 : vector<16x64xf32>
    %cst_67 = arith.constant 0.707106769 : f32
    %167 = vector.broadcast %cst_67 : f32 to vector<16x64xf32>
    %168 = arith.mulf %164, %167 : vector<16x64xf32>
    %cst_68 = arith.constant 0.000000e+00 : f32
    %169 = vector.broadcast %cst_68 : f32 to vector<16x64xf32>
    %170 = arith.cmpf oge, %168, %169 : vector<16x64xf32>
    %cst_69 = arith.constant 1.000000e+00 : f32
    %cst_70 = arith.constant -1.000000e+00 : f32
    %171 = vector.broadcast %cst_69 : f32 to vector<16x64xf32>
    %172 = vector.broadcast %cst_70 : f32 to vector<16x64xf32>
    %173 = arith.select %170, %171, %172 : vector<16x64xi1>, vector<16x64xf32>
    %174 = math.absf %168 : vector<16x64xf32>
    %cst_71 = arith.constant 0.327591091 : f32
    %175 = vector.broadcast %cst_71 : f32 to vector<16x64xf32>
    %176 = arith.mulf %175, %174 : vector<16x64xf32>
    %cst_72 = arith.constant 1.000000e+00 : f32
    %177 = vector.broadcast %cst_72 : f32 to vector<16x64xf32>
    %178 = arith.addf %177, %176 : vector<16x64xf32>
    %cst_73 = arith.constant 1.000000e+00 : f32
    %179 = vector.broadcast %cst_73 : f32 to vector<16x64xf32>
    %180 = arith.divf %179, %178 : vector<16x64xf32>
    %cst_74 = arith.constant 1.06140542 : f32
    %181 = vector.broadcast %cst_74 : f32 to vector<16x64xf32>
    %182 = arith.mulf %181, %180 : vector<16x64xf32>
    %cst_75 = arith.constant -1.45315206 : f32
    %183 = vector.broadcast %cst_75 : f32 to vector<16x64xf32>
    %184 = arith.addf %182, %183 : vector<16x64xf32>
    %185 = arith.mulf %184, %180 : vector<16x64xf32>
    %cst_76 = arith.constant 1.42141378 : f32
    %186 = vector.broadcast %cst_76 : f32 to vector<16x64xf32>
    %187 = arith.addf %185, %186 : vector<16x64xf32>
    %188 = arith.mulf %187, %180 : vector<16x64xf32>
    %cst_77 = arith.constant -0.284496725 : f32
    %189 = vector.broadcast %cst_77 : f32 to vector<16x64xf32>
    %190 = arith.addf %188, %189 : vector<16x64xf32>
    %191 = arith.mulf %190, %180 : vector<16x64xf32>
    %cst_78 = arith.constant 0.254829586 : f32
    %192 = vector.broadcast %cst_78 : f32 to vector<16x64xf32>
    %193 = arith.addf %191, %192 : vector<16x64xf32>
    %194 = arith.mulf %193, %180 : vector<16x64xf32>
    %cst_79 = arith.constant 0.000000e+00 : f32
    %195 = vector.broadcast %cst_79 : f32 to vector<16x64xf32>
    %196 = arith.subf %195, %174 : vector<16x64xf32>
    %197 = arith.mulf %196, %174 : vector<16x64xf32>
    %198 = math.exp %197 : vector<16x64xf32>
    %199 = arith.mulf %194, %198 : vector<16x64xf32>
    %cst_80 = arith.constant 1.000000e+00 : f32
    %200 = vector.broadcast %cst_80 : f32 to vector<16x64xf32>
    %201 = arith.subf %200, %199 : vector<16x64xf32>
    %202 = arith.mulf %173, %201 : vector<16x64xf32>
    %cst_81 = arith.constant 1.000000e+00 : f32
    %203 = vector.broadcast %cst_81 : f32 to vector<16x64xf32>
    %204 = arith.addf %203, %202 : vector<16x64xf32>
    %205 = arith.mulf %166, %204 : vector<16x64xf32>
    %c0_82 = arith.constant 0 : index
    %c0_83 = arith.constant 0 : index
    %c0_84 = arith.constant 0 : index
    %206 = vector.load %arg13[%c0_82, %c0_83, %c0_84] : memref<1x64x32xbf16, #tpu.memory_space<vmem>>, vector<1x64x32xbf16>
    %207 = vector.shape_cast %206 : vector<1x64x32xbf16> to vector<64x32xbf16>
    %208 = arith.truncf %205 : vector<16x64xf32> to vector<16x64xbf16>
    %cst_85 = arith.constant dense<0.000000e+00> : vector<16x32xf32>
    %209 = tpu.matmul %208, %207, %cst_85 {dimension_numbers = #tpu.dot_dimension_numbers<[1], [0], [0], [1], [0, 0, 1, 1], [], []>} : vector<16x64xbf16>, vector<64x32xbf16>, vector<16x32xf32> -> vector<16x32xf32>
    %210 = vector.extract_strided_slice %4 {offsets = [11, 0], sizes = [1, 32], strides = [1, 1]} : vector<24x64xf32> to vector<1x32xf32>
    %211 = vector.broadcast %210 : vector<1x32xf32> to vector<16x32xf32>
    %212 = arith.addf %209, %211 : vector<16x32xf32>
    %213 = arith.addf %7, %212 : vector<16x32xf32>
    %214 = vector.extract_strided_slice %4 {offsets = [12, 0], sizes = [1, 32], strides = [1, 1]} : vector<24x64xf32> to vector<1x32xf32>
    %215 = vector.extract_strided_slice %4 {offsets = [13, 0], sizes = [1, 32], strides = [1, 1]} : vector<24x64xf32> to vector<1x32xf32>
    %cst_86 = arith.constant dense<0.000000e+00> : vector<16x1xf32>
    %216 = tpu.matmul %213, %5, %cst_86 {dimension_numbers = #tpu.dot_dimension_numbers<[1], [0], [0], [1], [0, 0, 1, 1], [], []>} : vector<16x32xf32>, vector<32x1xf32>, vector<16x1xf32> -> vector<16x1xf32>
    %217 = vector.broadcast %216 : vector<16x1xf32> to vector<16x32xf32>
    %218 = arith.subf %213, %217 : vector<16x32xf32>
    %219 = arith.mulf %218, %218 : vector<16x32xf32>
    %cst_87 = arith.constant dense<0.000000e+00> : vector<16x1xf32>
    %220 = tpu.matmul %219, %5, %cst_87 {dimension_numbers = #tpu.dot_dimension_numbers<[1], [0], [0], [1], [0, 0, 1, 1], [], []>} : vector<16x32xf32>, vector<32x1xf32>, vector<16x1xf32> -> vector<16x1xf32>
    %cst_88 = arith.constant 9.99999974E-6 : f32
    %221 = vector.broadcast %cst_88 : f32 to vector<16x1xf32>
    %222 = arith.addf %220, %221 : vector<16x1xf32>
    %223 = math.rsqrt %222 : vector<16x1xf32>
    %224 = vector.broadcast %223 : vector<16x1xf32> to vector<16x32xf32>
    %225 = arith.mulf %218, %224 : vector<16x32xf32>
    %226 = vector.broadcast %214 : vector<1x32xf32> to vector<16x32xf32>
    %227 = arith.mulf %225, %226 : vector<16x32xf32>
    %228 = vector.broadcast %215 : vector<1x32xf32> to vector<16x32xf32>
    %229 = arith.addf %227, %228 : vector<16x32xf32>
    %c0_89 = arith.constant 0 : index
    %c0_90 = arith.constant 0 : index
    %230 = vector.load %arg3[%c0_89, %c0_90] : memref<2x16xf32, #tpu.memory_space<vmem>>, vector<2x16xf32>
    %cst_91 = arith.constant dense<0.000000e+00> : vector<2x32xf32>
    %231 = tpu.matmul %230, %229, %cst_91 {dimension_numbers = #tpu.dot_dimension_numbers<[1], [0], [0], [1], [0, 0, 1, 1], [], []>} : vector<2x16xf32>, vector<16x32xf32>, vector<2x32xf32> -> vector<2x32xf32>
    %c0_92 = arith.constant 0 : index
    %c0_93 = arith.constant 0 : index
    %c0_94 = arith.constant 0 : index
    %232 = vector.load %arg14[%c0_92, %c0_93, %c0_94] : memref<1x32x32xbf16, #tpu.memory_space<vmem>>, vector<1x32x32xbf16>
    %233 = vector.shape_cast %232 : vector<1x32x32xbf16> to vector<32x32xbf16>
    %234 = arith.truncf %231 : vector<2x32xf32> to vector<2x32xbf16>
    %cst_95 = arith.constant dense<0.000000e+00> : vector<2x32xf32>
    %235 = tpu.matmul %234, %233, %cst_95 {dimension_numbers = #tpu.dot_dimension_numbers<[1], [0], [0], [1], [0, 0, 1, 1], [], []>} : vector<2x32xbf16>, vector<32x32xbf16>, vector<2x32xf32> -> vector<2x32xf32>
    %236 = vector.extract_strided_slice %4 {offsets = [14, 0], sizes = [1, 32], strides = [1, 1]} : vector<24x64xf32> to vector<1x32xf32>
    %237 = vector.broadcast %236 : vector<1x32xf32> to vector<2x32xf32>
    %238 = arith.addf %235, %237 : vector<2x32xf32>
    %239 = vector.extract_strided_slice %4 {offsets = [15, 0], sizes = [1, 32], strides = [1, 1]} : vector<24x64xf32> to vector<1x32xf32>
    %240 = vector.extract_strided_slice %4 {offsets = [16, 0], sizes = [1, 32], strides = [1, 1]} : vector<24x64xf32> to vector<1x32xf32>
    %cst_96 = arith.constant dense<0.000000e+00> : vector<2x1xf32>
    %241 = tpu.matmul %238, %5, %cst_96 {dimension_numbers = #tpu.dot_dimension_numbers<[1], [0], [0], [1], [0, 0, 1, 1], [], []>} : vector<2x32xf32>, vector<32x1xf32>, vector<2x1xf32> -> vector<2x1xf32>
    %242 = vector.broadcast %241 : vector<2x1xf32> to vector<2x32xf32>
    %243 = arith.subf %238, %242 : vector<2x32xf32>
    %244 = arith.mulf %243, %243 : vector<2x32xf32>
    %cst_97 = arith.constant dense<0.000000e+00> : vector<2x1xf32>
    %245 = tpu.matmul %244, %5, %cst_97 {dimension_numbers = #tpu.dot_dimension_numbers<[1], [0], [0], [1], [0, 0, 1, 1], [], []>} : vector<2x32xf32>, vector<32x1xf32>, vector<2x1xf32> -> vector<2x1xf32>
    %cst_98 = arith.constant 9.99999974E-6 : f32
    %246 = vector.broadcast %cst_98 : f32 to vector<2x1xf32>
    %247 = arith.addf %245, %246 : vector<2x1xf32>
    %248 = math.rsqrt %247 : vector<2x1xf32>
    %249 = vector.broadcast %248 : vector<2x1xf32> to vector<2x32xf32>
    %250 = arith.mulf %243, %249 : vector<2x32xf32>
    %251 = vector.broadcast %239 : vector<1x32xf32> to vector<2x32xf32>
    %252 = arith.mulf %250, %251 : vector<2x32xf32>
    %253 = vector.broadcast %240 : vector<1x32xf32> to vector<2x32xf32>
    %254 = arith.addf %252, %253 : vector<2x32xf32>
    %cst_99 = arith.constant 5.000000e-01 : f32
    %255 = vector.broadcast %cst_99 : f32 to vector<2x32xf32>
    %256 = arith.mulf %255, %254 : vector<2x32xf32>
    %cst_100 = arith.constant 0.707106769 : f32
    %257 = vector.broadcast %cst_100 : f32 to vector<2x32xf32>
    %258 = arith.mulf %254, %257 : vector<2x32xf32>
    %cst_101 = arith.constant 0.000000e+00 : f32
    %259 = vector.broadcast %cst_101 : f32 to vector<2x32xf32>
    %260 = arith.cmpf oge, %258, %259 : vector<2x32xf32>
    %cst_102 = arith.constant 1.000000e+00 : f32
    %cst_103 = arith.constant -1.000000e+00 : f32
    %261 = vector.broadcast %cst_102 : f32 to vector<2x32xf32>
    %262 = vector.broadcast %cst_103 : f32 to vector<2x32xf32>
    %263 = arith.select %260, %261, %262 : vector<2x32xi1>, vector<2x32xf32>
    %264 = math.absf %258 : vector<2x32xf32>
    %cst_104 = arith.constant 0.327591091 : f32
    %265 = vector.broadcast %cst_104 : f32 to vector<2x32xf32>
    %266 = arith.mulf %265, %264 : vector<2x32xf32>
    %cst_105 = arith.constant 1.000000e+00 : f32
    %267 = vector.broadcast %cst_105 : f32 to vector<2x32xf32>
    %268 = arith.addf %267, %266 : vector<2x32xf32>
    %cst_106 = arith.constant 1.000000e+00 : f32
    %269 = vector.broadcast %cst_106 : f32 to vector<2x32xf32>
    %270 = arith.divf %269, %268 : vector<2x32xf32>
    %cst_107 = arith.constant 1.06140542 : f32
    %271 = vector.broadcast %cst_107 : f32 to vector<2x32xf32>
    %272 = arith.mulf %271, %270 : vector<2x32xf32>
    %cst_108 = arith.constant -1.45315206 : f32
    %273 = vector.broadcast %cst_108 : f32 to vector<2x32xf32>
    %274 = arith.addf %272, %273 : vector<2x32xf32>
    %275 = arith.mulf %274, %270 : vector<2x32xf32>
    %cst_109 = arith.constant 1.42141378 : f32
    %276 = vector.broadcast %cst_109 : f32 to vector<2x32xf32>
    %277 = arith.addf %275, %276 : vector<2x32xf32>
    %278 = arith.mulf %277, %270 : vector<2x32xf32>
    %cst_110 = arith.constant -0.284496725 : f32
    %279 = vector.broadcast %cst_110 : f32 to vector<2x32xf32>
    %280 = arith.addf %278, %279 : vector<2x32xf32>
    %281 = arith.mulf %280, %270 : vector<2x32xf32>
    %cst_111 = arith.constant 0.254829586 : f32
    %282 = vector.broadcast %cst_111 : f32 to vector<2x32xf32>
    %283 = arith.addf %281, %282 : vector<2x32xf32>
    %284 = arith.mulf %283, %270 : vector<2x32xf32>
    %cst_112 = arith.constant 0.000000e+00 : f32
    %285 = vector.broadcast %cst_112 : f32 to vector<2x32xf32>
    %286 = arith.subf %285, %264 : vector<2x32xf32>
    %287 = arith.mulf %286, %264 : vector<2x32xf32>
    %288 = math.exp %287 : vector<2x32xf32>
    %289 = arith.mulf %284, %288 : vector<2x32xf32>
    %cst_113 = arith.constant 1.000000e+00 : f32
    %290 = vector.broadcast %cst_113 : f32 to vector<2x32xf32>
    %291 = arith.subf %290, %289 : vector<2x32xf32>
    %292 = arith.mulf %263, %291 : vector<2x32xf32>
    %cst_114 = arith.constant 1.000000e+00 : f32
    %293 = vector.broadcast %cst_114 : f32 to vector<2x32xf32>
    %294 = arith.addf %293, %292 : vector<2x32xf32>
    %295 = arith.mulf %256, %294 : vector<2x32xf32>
    %c0_115 = arith.constant 0 : index
    %c0_116 = arith.constant 0 : index
    %c0_117 = arith.constant 0 : index
    %296 = vector.load %arg15[%c0_115, %c0_116, %c0_117] : memref<1x32x32xbf16, #tpu.memory_space<vmem>>, vector<1x32x32xbf16>
    %297 = vector.shape_cast %296 : vector<1x32x32xbf16> to vector<32x32xbf16>
    %298 = arith.truncf %295 : vector<2x32xf32> to vector<2x32xbf16>
    %cst_118 = arith.constant dense<0.000000e+00> : vector<2x32xf32>
    %299 = tpu.matmul %298, %297, %cst_118 {dimension_numbers = #tpu.dot_dimension_numbers<[1], [0], [0], [1], [0, 0, 1, 1], [], []>} : vector<2x32xbf16>, vector<32x32xbf16>, vector<2x32xf32> -> vector<2x32xf32>
    %300 = vector.extract_strided_slice %4 {offsets = [17, 0], sizes = [1, 32], strides = [1, 1]} : vector<24x64xf32> to vector<1x32xf32>
    %301 = vector.broadcast %300 : vector<1x32xf32> to vector<2x32xf32>
    %302 = arith.addf %299, %301 : vector<2x32xf32>
    %303 = arith.negf %302 : vector<2x32xf32>
    %304 = math.exp %303 : vector<2x32xf32>
    %cst_119 = arith.constant 1.000000e+00 : f32
    %305 = vector.broadcast %cst_119 : f32 to vector<2x32xf32>
    %306 = arith.addf %305, %304 : vector<2x32xf32>
    %307 = arith.divf %305, %306 : vector<2x32xf32>
    %c0_120 = arith.constant 0 : index
    %c0_121 = arith.constant 0 : index
    %308 = vector.load %arg4[%c0_120, %c0_121] : memref<16x2xf32, #tpu.memory_space<vmem>>, vector<16x2xf32>
    %cst_122 = arith.constant dense<0.000000e+00> : vector<16x32xf32>
    %309 = tpu.matmul %308, %307, %cst_122 {dimension_numbers = #tpu.dot_dimension_numbers<[1], [0], [0], [1], [0, 0, 1, 1], [], []>} : vector<16x2xf32>, vector<2x32xf32>, vector<16x32xf32> -> vector<16x32xf32>
    %310 = arith.mulf %229, %309 : vector<16x32xf32>
    %c0_123 = arith.constant 0 : index
    %c0_124 = arith.constant 0 : index
    %311 = vector.load %arg19[%c0_123, %c0_124] : memref<16x32xf32, #tpu.memory_space<vmem>>, vector<16x32xf32>
    tpu.vector_store %arg19[%c0_123, %c0_124], %310 {strides = array<i32>} : memref<16x32xf32, #tpu.memory_space<vmem>>, vector<16x32xf32>,
    %c0_125 = arith.constant 0 : index
    %c0_126 = arith.constant 0 : index
    %312 = vector.load %arg21[%c0_125, %c0_126] : memref<16x32xf32, #tpu.memory_space<vmem>>, vector<16x32xf32>
    %c0_127 = arith.constant 0 : index
    %c0_128 = arith.constant 0 : index
    %c0_129 = arith.constant 0 : index
    %313 = vector.load %arg16[%c0_127, %c0_128, %c0_129] : memref<1x32x32xbf16, #tpu.memory_space<vmem>>, vector<1x32x32xbf16>
    %314 = vector.shape_cast %313 : vector<1x32x32xbf16> to vector<32x32xbf16>
    %315 = arith.truncf %310 : vector<16x32xf32> to vector<16x32xbf16>
    %cst_130 = arith.constant dense<0.000000e+00> : vector<16x32xf32>
    %316 = tpu.matmul %315, %314, %cst_130 {dimension_numbers = #tpu.dot_dimension_numbers<[1], [0], [0], [1], [0, 0, 1, 1], [], []>} : vector<16x32xbf16>, vector<32x32xbf16>, vector<16x32xf32> -> vector<16x32xf32>
    %317 = arith.addf %312, %316 : vector<16x32xf32>
    %c0_131 = arith.constant 0 : index
    %c0_132 = arith.constant 0 : index
    %318 = vector.load %arg21[%c0_131, %c0_132] : memref<16x32xf32, #tpu.memory_space<vmem>>, vector<16x32xf32>
    tpu.vector_store %arg21[%c0_131, %c0_132], %317 {strides = array<i32>} : memref<16x32xf32, #tpu.memory_space<vmem>>, vector<16x32xf32>,
    %c1_i32 = arith.constant 1 : i32
    %319 = arith.cmpi eq, %arg0, %c1_i32 : i32
    %320 = arith.extui %319 : i1 to i32
    %c0_i32_133 = arith.constant 0 : i32
    %321 = arith.cmpi ne, %320, %c0_i32_133 : i32
    scf.if %321 {
      %c0_134 = arith.constant 0 : index
      %c0_135 = arith.constant 0 : index
      %322 = vector.load %arg7[%c0_134, %c0_135] : memref<3x32xf32, #tpu.memory_space<vmem>>, vector<3x32xf32>
      %c0_136 = arith.constant 0 : index
      %c0_137 = arith.constant 0 : index
      %323 = vector.load %arg21[%c0_136, %c0_137] : memref<16x32xf32, #tpu.memory_space<vmem>>, vector<16x32xf32>
      %324 = arith.addf %310, %323 : vector<16x32xf32>
      %325 = vector.extract_strided_slice %322 {offsets = [0, 0], sizes = [1, 32], strides = [1, 1]} : vector<3x32xf32> to vector<1x32xf32>
      %326 = vector.broadcast %325 : vector<1x32xf32> to vector<16x32xf32>
      %327 = arith.addf %324, %326 : vector<16x32xf32>
      %328 = vector.extract_strided_slice %322 {offsets = [1, 0], sizes = [1, 32], strides = [1, 1]} : vector<3x32xf32> to vector<1x32xf32>
      %329 = vector.extract_strided_slice %322 {offsets = [2, 0], sizes = [1, 32], strides = [1, 1]} : vector<3x32xf32> to vector<1x32xf32>
      %cst_138 = arith.constant dense<0.000000e+00> : vector<16x1xf32>
      %330 = tpu.matmul %327, %5, %cst_138 {dimension_numbers = #tpu.dot_dimension_numbers<[1], [0], [0], [1], [0, 0, 1, 1], [], []>} : vector<16x32xf32>, vector<32x1xf32>, vector<16x1xf32> -> vector<16x1xf32>
      %331 = vector.broadcast %330 : vector<16x1xf32> to vector<16x32xf32>
      %332 = arith.subf %327, %331 : vector<16x32xf32>
      %333 = arith.mulf %332, %332 : vector<16x32xf32>
      %cst_139 = arith.constant dense<0.000000e+00> : vector<16x1xf32>
      %334 = tpu.matmul %333, %5, %cst_139 {dimension_numbers = #tpu.dot_dimension_numbers<[1], [0], [0], [1], [0, 0, 1, 1], [], []>} : vector<16x32xf32>, vector<32x1xf32>, vector<16x1xf32> -> vector<16x1xf32>
      %cst_140 = arith.constant 9.99999974E-6 : f32
      %335 = vector.broadcast %cst_140 : f32 to vector<16x1xf32>
      %336 = arith.addf %334, %335 : vector<16x1xf32>
      %337 = math.rsqrt %336 : vector<16x1xf32>
      %338 = vector.broadcast %337 : vector<16x1xf32> to vector<16x32xf32>
      %339 = arith.mulf %332, %338 : vector<16x32xf32>
      %340 = vector.broadcast %328 : vector<1x32xf32> to vector<16x32xf32>
      %341 = arith.mulf %339, %340 : vector<16x32xf32>
      %342 = vector.broadcast %329 : vector<1x32xf32> to vector<16x32xf32>
      %343 = arith.addf %341, %342 : vector<16x32xf32>
      %c0_141 = arith.constant 0 : index
      %c0_142 = arith.constant 0 : index
      %344 = vector.load %arg18[%c0_141, %c0_142] : memref<16x32xf32, #tpu.memory_space<vmem>>, vector<16x32xf32>
      tpu.vector_store %arg18[%c0_141, %c0_142], %343 {strides = array<i32>} : memref<16x32xf32, #tpu.memory_space<vmem>>, vector<16x32xf32>,
    } else {
    }
    return
  }
  func.func @transform_0(%arg0: i32) -> (i32, i32) {
    %c0_i32 = arith.constant 0 : i32
    %c0_i32_0 = arith.constant 0 : i32
    %c0_i32_1 = arith.constant 0 : i32
    return %c0_i32, %c0_i32_0 : i32, i32
  }
  func.func @transform_1(%arg0: i32) -> (i32, i32) {
    %c0_i32 = arith.constant 0 : i32
    %c0_i32_0 = arith.constant 0 : i32
    %c0_i32_1 = arith.constant 0 : i32
    return %c0_i32, %c0_i32_0 : i32, i32
  }
  func.func @transform_2(%arg0: i32) -> (i32, i32) {
    %c0_i32 = arith.constant 0 : i32
    %c0_i32_0 = arith.constant 0 : i32
    %c0_i32_1 = arith.constant 0 : i32
    return %c0_i32, %c0_i32_0 : i32, i32
  }
  func.func @transform_3(%arg0: i32) -> (i32, i32) {
    %c0_i32 = arith.constant 0 : i32
    %c0_i32_0 = arith.constant 0 : i32
    %c0_i32_1 = arith.constant 0 : i32
    return %c0_i32, %c0_i32_0 : i32, i32
  }
  func.func @transform_4(%arg0: i32) -> (i32, i32) {
    %c0_i32 = arith.constant 0 : i32
    %c0_i32_0 = arith.constant 0 : i32
    %c0_i32_1 = arith.constant 0 : i32
    return %c0_i32, %c0_i32_0 : i32, i32
  }
  func.func @transform_5(%arg0: i32) -> (i32, i32) {
    %c0_i32 = arith.constant 0 : i32
    %c0_i32_0 = arith.constant 0 : i32
    %c0_i32_1 = arith.constant 0 : i32
    return %c0_i32, %c0_i32_0 : i32, i32
  }
  func.func @transform_6(%arg0: i32) -> (i32, i32) {
    %c0_i32 = arith.constant 0 : i32
    %c0_i32_0 = arith.constant 0 : i32
    %c0_i32_1 = arith.constant 0 : i32
    return %c0_i32, %c0_i32_0 : i32, i32
  }
  func.func @transform_7(%arg0: i32) -> (i32, i32, i32) {
    %c0_i32 = arith.constant 0 : i32
    %c0_i32_0 = arith.constant 0 : i32
    %c0_i32_1 = arith.constant 0 : i32
    return %arg0, %c0_i32, %c0_i32_0 : i32, i32, i32
  }
  func.func @transform_8(%arg0: i32) -> (i32, i32, i32) {
    %c0_i32 = arith.constant 0 : i32
    %c0_i32_0 = arith.constant 0 : i32
    %c0_i32_1 = arith.constant 0 : i32
    return %arg0, %c0_i32, %c0_i32_0 : i32, i32, i32
  }
  func.func @transform_9(%arg0: i32) -> (i32, i32, i32) {
    %c0_i32 = arith.constant 0 : i32
    %c0_i32_0 = arith.constant 0 : i32
    %c0_i32_1 = arith.constant 0 : i32
    return %arg0, %c0_i32, %c0_i32_0 : i32, i32, i32
  }
  func.func @transform_10(%arg0: i32) -> (i32, i32, i32) {
    %c0_i32 = arith.constant 0 : i32
    %c0_i32_0 = arith.constant 0 : i32
    %c0_i32_1 = arith.constant 0 : i32
    return %arg0, %c0_i32, %c0_i32_0 : i32, i32, i32
  }
  func.func @transform_11(%arg0: i32) -> (i32, i32, i32) {
    %c0_i32 = arith.constant 0 : i32
    %c0_i32_0 = arith.constant 0 : i32
    %c0_i32_1 = arith.constant 0 : i32
    return %arg0, %c0_i32, %c0_i32_0 : i32, i32, i32
  }
  func.func @transform_12(%arg0: i32) -> (i32, i32, i32) {
    %c0_i32 = arith.constant 0 : i32
    %c0_i32_0 = arith.constant 0 : i32
    %c0_i32_1 = arith.constant 0 : i32
    return %arg0, %c0_i32, %c0_i32_0 : i32, i32, i32
  }
  func.func @transform_13(%arg0: i32) -> (i32, i32, i32) {
    %c0_i32 = arith.constant 0 : i32
    %c0_i32_0 = arith.constant 0 : i32
    %c0_i32_1 = arith.constant 0 : i32
    return %arg0, %c0_i32, %c0_i32_0 : i32, i32, i32
  }
  func.func @transform_14(%arg0: i32) -> (i32, i32, i32) {
    %c0_i32 = arith.constant 0 : i32
    %c0_i32_0 = arith.constant 0 : i32
    %c0_i32_1 = arith.constant 0 : i32
    return %arg0, %c0_i32, %c0_i32_0 : i32, i32, i32
  }
  func.func @transform_15(%arg0: i32) -> (i32, i32, i32) {
    %c0_i32 = arith.constant 0 : i32
    %c0_i32_0 = arith.constant 0 : i32
    %c0_i32_1 = arith.constant 0 : i32
    return %arg0, %c0_i32, %c0_i32_0 : i32, i32, i32
  }
  func.func @transform_16(%arg0: i32) -> (i32, i32, i32) {
    %c0_i32 = arith.constant 0 : i32
    %c0_i32_0 = arith.constant 0 : i32
    %c0_i32_1 = arith.constant 0 : i32
    return %arg0, %c0_i32, %c0_i32_0 : i32, i32, i32
  }
  func.func @transform_17(%arg0: i32) -> (i32, i32) {
    %c0_i32 = arith.constant 0 : i32
    %c0_i32_0 = arith.constant 0 : i32
    %c0_i32_1 = arith.constant 0 : i32
    return %c0_i32, %c0_i32_0 : i32, i32
  }
}

</mosaic_0001>

<bundles_post_ra>
// kernel: tpu_custom_call.1
= control target key start
LH: loop header
LB: loop body
LE: loop exit
PB: predicated region body
PF: predicated region fallthrough
CT: control target
= control target key end

     0   :  { %s5590_s0 = inlined_call_operand.hbm [shape: f32[16,32], index: 0, kind: input, shape index: {}]   ;;  %s5591_s1 = inlined_call_operand.vmem [shape: f32[32,16], index: 1, kind: input, shape index: {}]   ;;  %s5592_s2 = inlined_call_operand.hbm [shape: f32[2,16], index: 2, kind: input, shape index: {}]   ;;  %s5593_s3 = inlined_call_operand.vmem [shape: f32[16,2], index: 3, kind: input, shape index: {}]   ;;  %s5594_s4 = inlined_call_operand.vmem [shape: bf16[64,4], index: 4, kind: input, shape index: {}]   ;;  %s5595_s5 = inlined_call_operand.hbm [shape: bf16[4,64], index: 5, kind: input, shape index: {}]   ;;  %s5596_s6 = inlined_call_operand.hbm [shape: f32[3,32], index: 6, kind: input, shape index: {}]   ;;  %s5597_s7 = inlined_call_operand.vmem [shape: bf16[2,32,160], index: 7, kind: input, shape index: {}]   ;;  %s5598_s8 = inlined_call_operand.hbm [shape: bf16[2,32,96], index: 8, kind: input, shape index: {}]   ;;  %s5599_s9 = inlined_call_operand.vmem [shape: bf16[2,64,64], index: 9, kind: input, shape index: {}]   ;;  %s5600_s10 = inlined_call_operand.hbm [shape: bf16[2,32,32], index: 10, kind: input, shape index: {}]   ;;  %s5601_s11 = inlined_call_operand.hbm [shape: bf16[2,32,32], index: 11, kind: input, shape index: {}]   ;;  %s5602_s12 = inlined_call_operand.vmem [shape: bf16[2,64,32], index: 12, kind: input, shape index: {}]   ;;  %s5603_s13 = inlined_call_operand.vmem [shape: bf16[2,32,32], index: 13, kind: input, shape index: {}]   ;;  %s5604_s14 = inlined_call_operand.hbm [shape: bf16[2,32,32], index: 14, kind: input, shape index: {}]   ;;  %s5605_s15 = inlined_call_operand.hbm [shape: bf16[2,32,32], index: 15, kind: input, shape index: {}]   ;;  %s5606_s16 = inlined_call_operand.vmem [shape: f32[2,24,64], index: 16, kind: input, shape index: {}]   ;;  %s5607_s17 = inlined_call_operand.hbm [shape: f32[16,32], index: 17, kind: output, shape index: {}]  }
   0x1   :  { %5632 = sst [smem:[#allocation28_spill]] %s5590_s0 }
   0x2   :  { %5633 = sst [smem:[#allocation29_spill]] %s5591_s1 }
   0x3   :  { %5634 = sst [smem:[#allocation30_spill]] %s5593_s3 }
   0x4   :  { %5635 = sst [smem:[#allocation31_spill]] %s5594_s4 }
   0x5   :  { %5636 = sst [smem:[#allocation32_spill]] %s5597_s7 }
   0x6   :  { %5637 = sst [smem:[#allocation33_spill]] %s5598_s8 }
   0x7   :  { %5638 = sst [smem:[#allocation34_spill]] %s5599_s9 }
   0x8   :  { %5639 = sst [smem:[#allocation35_spill]] %s5600_s10 }
   0x9   :  { %5640 = sst [smem:[#allocation36_spill]] %s5602_s12 }
   0xa   :  { %5641 = sst [smem:[#allocation37_spill]] %s5603_s13 }
   0xb   :  { %5642 = sst [smem:[#allocation38_spill]] %s5606_s16 }
   0xc   :  { %5643 = sst [smem:[#allocation39_spill]] %s5607_s17 }
   0xd   :  { %22 = vsyncpa [#allocation6], 0 }
   0xe   :  { %23 = vsyncpa [#allocation9], 0 }
   0xf   :  { %24 = vsyncpa [#allocation12], 0 }
  0x10   :  { %25 = vsyncpa [#allocation7], 0  ;;  %s4810_s24 = smov 0   ;;  %s4812_s25 = smov 0  }
  0x11   :  { %s4814_s26 = smov 0   ;;  %s4816_s27 = smov 0  }
  0x12 LB: > { %5644 = sst [smem:[#allocation24_spill]] %s4687_s26  ;;  %s4829_s28 = sadd.s32 4294967295, %s4691_s27   ;;  %s4691_s27 = sphi %s4816_s27, %s5690_s27   ;;  %s4687_s26 = sphi %s4814_s26, %s5692_s26   ;;  %s4683_s25 = sphi %s4812_s25, %s5694_s25   ;;  %s4679_s24 = sphi %s4810_s24, %s5693_s24  }
  0x13   : > { %s4832_s29 = sadd.s32 1, %s4691_s27   ;;  %s211_s30 = sadd.s32 1, %s4687_s26 }
  0x14   : > { %5645 = sst [smem:[#allocation25_spill]] %s4832_s29  ;;  %s208_s0 = ssub.s32 %s4691_s27, %s4832_s29 }
  0x15   : > { %p209_p0 = scmp.eq.s32.totalorder %s208_s0, 0  ;;  %p218_p1 = scmp.ne.s32.totalorder %s4687_s26, %s4683_s25 }
  0x16   : > { %p219_p2 = scmp.eq.s32.totalorder %s4691_s27, 0  ;;  %p224_p3 = scmp.ne.s32.totalorder %s4683_s25, %s4679_s24 }
  0x17   : > { %s4842_s18 = scalar_select %p209_p0, %s4687_s26, %s211_s30  }
  0x18   : > { %p4844_p4 = por %p219_p2, %p218_p1  ;;  %p5615_p5 = scmp.eq.s32.totalorder %s4829_s28, 0 }
  0x19   : > { %5646 = sst [smem:[#allocation26_spill]] %s4842_s18  ;;  %p3565_p6 = scmp.ge.s32.totalorder %s4691_s27, 1 }
  0x1a   : > { %s5647_s19 = scalar_select %p4844_p4, 1, 0 }
  0x1b   : > { %p464_p7 = scmp.lt.s32.totalorder %s4691_s27, 3  ;;  %p4853_p8 = por %p5615_p5, %p224_p3 }
  0x1c   : > { %s4693_s21 = smov [#allocation5]   ;;  %s540_s24 = sand.u32 1, %s4691_s27  }
  0x1d   : > { %s5648_s1 = scalar_select %p4853_p8, 1, 0 }
  0x1e   : > { %p4858_p10 = pnand %p3565_p6, %p464_p7  ;;  %s476_s22 = sshll.u32 %s4693_s21, 4  ;;  %s477_s22 = int_to_ptr.vmem [resolvable:$true] %s476_s22 }
  0x1f   : > { %5649 = sst [smem:[#allocation27_spill]] %s5648_s1  ;;  %s542_s0 = sand.u32 1, %s4687_s26  }
  0x20   : > { %s5650_s20 = scalar_select %p4858_p10, 1, 0 }
  0x21   : > { %p4169_p11 = pneg %p4858_p10  ;;  %s5652_s29 = sld [smem:[#allocation28_spill]] }
  0x23   : > { %p4866_p12 = pnand %p4169_p11, %p5615_p5 }
  0x25   : > { %s5651_s23 = scalar_select %p4866_p12, 1, 0 }
  0x26   : > { %p4881_p1 = pneg %p4866_p12 }
  0x27   : > { %s4353_s17 = scalar_lea.hbm %s5652_s29, 256 }
  0x28   : > { %p4354_p0 = scmp.ne.s32.totalorder %s5652_s29, %s4353_s17  ;;  %p4360_p6 = scmp.lt.u32.totalorder %s4353_s17, %s5652_s29 }
  0x29   : > { %s5653_s21 = scalar_select %p4881_p1, 1, 0 }
  0x2a   : > { %p4356_p2 = pnand %p4881_p1, %p4354_p0 }
  0x2c   : > { %p4357_p3 = pneg %p4356_p2 }
  0x2e   : > { %p4362_p7 = pnand %p4360_p6, %p4357_p3 }
  0x30   : > { %4365 = shalt.err (!%p4362_p7)
}
  0x31   : > { %s4366_s18 = scalar_lea.vmem %s477_s22, 256  ;;  %p4374_p13 = scmp.lt.s32.totalorder %s477_s22, %s477_s22 }
  0x32   : > { %p4367_p11 = scmp.ne.s32.totalorder %s477_s22, %s4366_s18  ;;  %p4375_p8 = scmp.lt.s32.totalorder %s4366_s18, %s4366_s18 }
  0x34   : > { %p4369_p9 = pnand %p4367_p11, %p4881_p1  ;;  %p4376_p10 = por %p4375_p8, %p4374_p13 }
  0x36   : > { %p4370_p5 = pneg %p4369_p9 }
  0x38   : > { %p4377_p4 = pnand %p4376_p10, %p4370_p5 }
  0x3a   : > { %4380 = shalt.err (!%p4377_p4)
}
  0x3b   : > { %s4694_s3 = smov 128   ;;  %s4695_s4 = smov 8  }
  0x3c   : > { %4172 = dma.hbm_to_vmem [thread:$0]  (!%p4866_p12), %s5652_s29, 256, %s477_s22, [#allocation6], %s4694_s3, %s4694_s3, %s4695_s4  }
  0x3d   : > { %s4897_s17 = sshll.u32 %s542_s0, 4  ;;  %s4900_s30 = sshll.u32 %s4691_s27, 8 }
  0x3e   : > { %s5654_s8 = sld [smem:[#allocation33_spill]]  ;;  %s544_s9 = scalar_lea.vmem [#allocation13], %s4897_s17 }
  0x3f   : > { %s551_s7 = sshll.u32 %s544_s9, 4  ;;  %p5655_p4 = scmp.ne.s32.totalorder %s5647_s19, 0  ;;  %s4917_s7 = int_to_ptr.vmem [resolvable:$true] %s551_s7 }
  0x40   : > { %p5656_p5 = scmp.lt.s32.totalorder %s4691_s27, 2  ;;  %s4919_s0 = scalar_lea.sflag [#allocation6], %s540_s24 }
  0x42   : > { %p4913_p8 = pnand %p5656_p5, %p5655_p4 }
  0x44   : > { %s4906_s12 = scalar_lea.hbm %s5654_s8, %s4900_s30  ;;  %p4925_p10 = pneg %p4913_p8 }
  0x45   : > { %s5657_s22 = scalar_select %p4913_p8, 1, 0 }
  0x46   : > { %s4381_s26 = scalar_lea.hbm %s4906_s12, 256  ;;  %s4386_s19 = scalar_lea.hbm %s5654_s8, 512 }
  0x47   : > { %p4382_p9 = scmp.ne.s32.totalorder %s4906_s12, %s4381_s26  ;;  %p4387_p2 = scmp.lt.u32.totalorder %s4906_s12, %s5654_s8 }
  0x48   : > { %s5658_s3 = scalar_select %p4925_p10, 1, 0 }
  0x49   : > { %p4384_p13 = pnand %p4925_p10, %p4382_p9  ;;  %p4388_p3 = scmp.lt.u32.totalorder %s4386_s19, %s4381_s26 }
  0x4a   : > { %p4390_p7 = scmp.lt.u32.totalorder %s4381_s26, %s4906_s12 }
  0x4b   : > { %p4385_p0 = pneg %p4384_p13  ;;  %p4389_p6 = por %p4388_p3, %p4387_p2 }
  0x4d   : > { %p4391_p11 = por %p4390_p7, %p4389_p6 }
  0x4f   : > { %p4392_p4 = pnand %p4391_p11, %p4385_p0 }
  0x51   : > { %4395 = shalt.err (!%p4392_p4)
}
  0x52   : > { %s4396_s24 = scalar_lea.vmem %s4917_s7, 256  ;;  %s4696_s16 = smov [#allocation13]  }
  0x53   : > { %p4397_p5 = scmp.ne.s32.totalorder %s4917_s7, %s4396_s24  ;;  %s4401_s18 = sshll.u32 %s4696_s16, 4  ;;  %s4402_s18 = int_to_ptr.vmem [resolvable:$false] %s4401_s18 }
  0x54   : > { %s4403_s9 = scalar_lea.vmem %s4402_s18, 512  ;;  %p4404_p12 = scmp.lt.s32.totalorder %s4917_s7, %s4402_s18 }
  0x55   : > { %p4399_p9 = pnand %p4397_p5, %p4925_p10  ;;  %p4405_p1 = scmp.lt.s32.totalorder %s4403_s9, %s4396_s24 }
  0x57   : > { %p4400_p13 = pneg %p4399_p9  ;;  %p4406_p2 = por %p4405_p1, %p4404_p12 }
  0x59   : > { %p4407_p3 = pnand %p4406_p2, %p4400_p13 }
  0x5b   : > { %4410 = shalt.err (!%p4407_p3)
}
  0x5c   : > { %s5624_s26 = smov 64   ;;  %s4698_s27 = smov 4  }
  0x5d   : > { %4185 = dma.hbm_to_vmem [thread:$0]  (!%p4913_p8), %s4906_s12, 256, %s4917_s7, %s4919_s0, %s5624_s26, %s5624_s26, %s4698_s27  }
  0x5e   : > { %s5659_s10 = sld [smem:[#allocation35_spill]]  ;;  %s573_s24 = scalar_lea.vmem [#allocation14], %s4897_s17 }
  0x5f   : > { %s580_s16 = sshll.u32 %s573_s24, 4  ;;  %s4965_s8 = scalar_lea.hbm %s5601_s11, %s4900_s30  ;;  %s4959_s16 = int_to_ptr.vmem [resolvable:$true] %s580_s16 }
  0x64   : > { %s4956_s13 = scalar_lea.hbm %s5659_s10, %s4900_s30  ;;  %s4416_s19 = scalar_lea.hbm %s5659_s10, 512 }
  0x65   : > { %s4411_s29 = scalar_lea.hbm %s4956_s13, 256  ;;  %p4417_p6 = scmp.lt.u32.totalorder %s4956_s13, %s5659_s10 }
  0x66   : > { %p4412_p12 = scmp.ne.s32.totalorder %s4956_s13, %s4411_s29  ;;  %p4418_p7 = scmp.lt.u32.totalorder %s4416_s19, %s4411_s29 }
  0x67   : > { %p4420_p4 = scmp.lt.u32.totalorder %s4411_s29, %s4956_s13 }
  0x68   : > { %p4414_p1 = pnand %p4412_p12, %p4925_p10  ;;  %p4419_p11 = por %p4418_p7, %p4417_p6 }
  0x6a   : > { %p4415_p0 = pneg %p4414_p1  ;;  %p4421_p5 = por %p4420_p4, %p4419_p11 }
  0x6c   : > { %p4422_p9 = pnand %p4421_p5, %p4415_p0 }
  0x6e   : > { %4425 = shalt.err (!%p4422_p9)
}
  0x6f   : > { %s4426_s24 = scalar_lea.vmem %s4959_s16, 256  ;;  %s4699_s18 = smov [#allocation14]  }
  0x70   : > { %p4427_p13 = scmp.ne.s32.totalorder %s4959_s16, %s4426_s24  ;;  %s4431_s9 = sshll.u32 %s4699_s18, 4  ;;  %s4432_s9 = int_to_ptr.vmem [resolvable:$false] %s4431_s9 }
  0x71   : > { %s4433_s26 = scalar_lea.vmem %s4432_s9, 512  ;;  %p4434_p12 = scmp.lt.s32.totalorder %s4959_s16, %s4432_s9 }
  0x72   : > { %p4429_p2 = pnand %p4427_p13, %p4925_p10  ;;  %p4435_p1 = scmp.lt.s32.totalorder %s4433_s26, %s4426_s24 }
  0x74   : > { %p4430_p3 = pneg %p4429_p2  ;;  %p4436_p6 = por %p4435_p1, %p4434_p12 }
  0x76   : > { %p4437_p7 = pnand %p4436_p6, %p4430_p3 }
  0x78   : > { %4440 = shalt.err (!%p4437_p7)
}
  0x79   : > { %s5660_s29 = smov 64   ;;  %s594_s7 = scalar_lea.vmem [#allocation15], %s4897_s17 }
  0x7a   : > { %4188 = dma.hbm_to_vmem [thread:$0]  (!%p4913_p8), %s4956_s13, 256, %s4959_s16, %s4919_s0, %s5660_s29, %s5660_s29, %s4698_s27  }
  0x7b   : > { %s601_s12 = sshll.u32 %s594_s7, 4  ;;  %s4700_s19 = smov [#allocation8]   ;;  %s4993_s12 = int_to_ptr.vmem [resolvable:$true] %s601_s12 }
  0x7c   : > { %s4995_s4 = sshll.u32 %s4700_s19, 4  ;;  %s4441_s24 = scalar_lea.hbm %s4965_s8, 256  ;;  %s494_s4 = int_to_ptr.vmem [resolvable:$true] %s4995_s4 }
  0x7d   : > { %p4442_p0 = scmp.ne.s32.totalorder %s4965_s8, %s4441_s24  ;;  %s4446_s26 = scalar_lea.hbm %s5601_s11, 512 }
  0x7e   : > { %p4447_p5 = scmp.lt.u32.totalorder %s4965_s8, %s5601_s11  ;;  %p4448_p9 = scmp.lt.u32.totalorder %s4446_s26, %s4441_s24 }
  0x7f   : > { %p4444_p11 = pnand %p4442_p0, %p4925_p10  ;;  %p4450_p2 = scmp.lt.u32.totalorder %s4441_s24, %s4965_s8 }
  0x80   : > { %p4449_p13 = por %p4448_p9, %p4447_p5 }
  0x81   : > { %p4445_p4 = pneg %p4444_p11 }
  0x82   : > { %p4451_p3 = por %p4450_p2, %p4449_p13 }
  0x84   : > { %p4452_p12 = pnand %p4451_p3, %p4445_p4 }
  0x86   : > { %4455 = shalt.err (!%p4452_p12)
}
  0x87   : > { %s4456_s13 = scalar_lea.vmem %s4993_s12, 256  ;;  %s4701_s16 = smov [#allocation15]  }
  0x88   : > { %p4457_p1 = scmp.ne.s32.totalorder %s4993_s12, %s4456_s13  ;;  %s4461_s7 = sshll.u32 %s4701_s16, 4  ;;  %s4462_s7 = int_to_ptr.vmem [resolvable:$false] %s4461_s7 }
  0x89   : > { %s4463_s10 = scalar_lea.vmem %s4462_s7, 512  ;;  %p4464_p0 = scmp.lt.s32.totalorder %s4993_s12, %s4462_s7 }
  0x8a   : > { %p4459_p6 = pnand %p4457_p1, %p4925_p10  ;;  %p4465_p11 = scmp.lt.s32.totalorder %s4463_s10, %s4456_s13 }
  0x8c   : > { %p4460_p7 = pneg %p4459_p6  ;;  %p4466_p5 = por %p4465_p11, %p4464_p0 }
  0x8e   : > { %p4467_p9 = pnand %p4466_p5, %p4460_p7 }
  0x90   : > { %4470 = shalt.err (!%p4467_p9)
}
  0x91   : > { %4191 = dma.hbm_to_vmem [thread:$0]  (!%p4913_p8), %s4965_s8, 256, %s4993_s12, %s4919_s0, %s5660_s29, %s5660_s29, %s4698_s27  }
  0x92   : > { %s4471_s24 = scalar_lea.hbm %s5592_s2, 32  ;;  %p5661_p13 = scmp.ne.s32.totalorder %s5653_s21, 0 }
  0x93   : > { %p4472_p4 = scmp.ne.s32.totalorder %s5592_s2, %s4471_s24  ;;  %p4478_p12 = scmp.lt.u32.totalorder %s4471_s24, %s5592_s2 }
  0x95   : > { %p4474_p2 = pnand %p4472_p4, %p5661_p13 }
  0x97   : > { %p4475_p3 = pneg %p4474_p2 }
  0x99   : > { %p4480_p1 = pnand %p4478_p12, %p4475_p3 }
  0x9b   : > { %4483 = shalt.err (!%p4480_p1)
}
  0x9c   : > { %s4484_s16 = scalar_lea.vmem %s494_s4, 32  ;;  %p4492_p11 = scmp.lt.s32.totalorder %s494_s4, %s494_s4 }
  0x9d   : > { %p4485_p6 = scmp.ne.s32.totalorder %s494_s4, %s4484_s16  ;;  %p4493_p5 = scmp.lt.s32.totalorder %s4484_s16, %s4484_s16 }
  0x9f   : > { %p4487_p7 = pnand %p4485_p6, %p5661_p13  ;;  %p4494_p9 = por %p4493_p5, %p4492_p11 }
  0xa1   : > { %p4488_p0 = pneg %p4487_p7 }
  0xa3   : > { %p4495_p8 = pnand %p4494_p9, %p4488_p0 }
  0xa5   : > { %4498 = shalt.err (!%p4495_p8)
}
  0xa6   : > { %p5662_p4 = scmp.ne.s32.totalorder %s5651_s23, 0  ;;  %s5045_s1 = scalar_lea.hbm %s5604_s14, %s4900_s30 }
  0xa7   : > { %s631_s19 = scalar_lea.vmem [#allocation16], %s4897_s17  ;;  %s4499_s18 = scalar_lea.hbm %s5045_s1, 256 }
  0xa8   : > { %4175 = dma.hbm_to_vmem [thread:$0]  (!%p5662_p4), %s5592_s2, 32, %s494_s4, [#allocation9]  }
  0xa9   : > { %s638_s24 = sshll.u32 %s631_s19, 4  ;;  %p4500_p8 = scmp.ne.s32.totalorder %s5045_s1, %s4499_s18  ;;  %s5048_s24 = int_to_ptr.vmem [resolvable:$true] %s638_s24 }
  0xaa   : > { %s4504_s26 = scalar_lea.hbm %s5604_s14, 512  ;;  %p4505_p12 = scmp.lt.u32.totalorder %s5045_s1, %s5604_s14 }
  0xab   : > { %p4502_p2 = pnand %p4500_p8, %p4925_p10  ;;  %p4506_p1 = scmp.lt.u32.totalorder %s4504_s26, %s4499_s18 }
  0xac   : > { %p4508_p7 = scmp.lt.u32.totalorder %s4499_s18, %s5045_s1 }
  0xad   : > { %p4503_p3 = pneg %p4502_p2  ;;  %p4507_p6 = por %p4506_p1, %p4505_p12 }
  0xaf   : > { %p4509_p0 = por %p4508_p7, %p4507_p6 }
  0xb1   : > { %p4510_p11 = pnand %p4509_p0, %p4503_p3 }
  0xb3   : > { %4513 = shalt.err (!%p4510_p11)
}
  0xb4   : > { %s4514_s8 = scalar_lea.vmem %s5048_s24, 256  ;;  %s4702_s12 = smov [#allocation16]  }
  0xb5   : > { %p4515_p5 = scmp.ne.s32.totalorder %s5048_s24, %s4514_s8  ;;  %s4519_s7 = sshll.u32 %s4702_s12, 4  ;;  %s4520_s7 = int_to_ptr.vmem [resolvable:$false] %s4519_s7 }
  0xb6   : > { %s4521_s10 = scalar_lea.vmem %s4520_s7, 512  ;;  %p4522_p2 = scmp.lt.s32.totalorder %s5048_s24, %s4520_s7 }
  0xb7   : > { %p4517_p9 = pnand %p4515_p5, %p4925_p10  ;;  %p4523_p4 = scmp.lt.s32.totalorder %s4521_s10, %s4514_s8 }
  0xb9   : > { %p4518_p8 = pneg %p4517_p9  ;;  %p4524_p12 = por %p4523_p4, %p4522_p2 }
  0xbb   : > { %p4525_p1 = pnand %p4524_p12, %p4518_p8 }
  0xbd   : > { %4528 = shalt.err (!%p4525_p1)
}
  0xbe   : > { %p5663_p3 = scmp.ne.s32.totalorder %s5657_s22, 0  ;;  %s4703_s19 = smov [#allocation10]  }
  0xbf   : > { %s510_s18 = sshll.u32 %s4703_s19, 4  ;;  %s4704_s9 = smov [#allocation11]   ;;  %s511_s18 = int_to_ptr.vmem [resolvable:$true] %s510_s18 }
  0xc0   : > { %4194 = dma.hbm_to_vmem [thread:$0]  (!%p5663_p3), %s5045_s1, 256, %s5048_s24, %s4919_s0, %s5660_s29, %s5660_s29, %s4698_s27  }
  0xc1   : > { %s521_s4 = sshll.u32 %s4704_s9, 4  ;;  %s4529_s16 = scalar_lea.hbm %s5595_s5, 32  ;;  %s522_s4 = int_to_ptr.vmem [resolvable:$true] %s521_s4 }
  0xc2   : > { %p4530_p4 = scmp.ne.s32.totalorder %s5595_s5, %s4529_s16  ;;  %p4536_p0 = scmp.lt.u32.totalorder %s4529_s16, %s5595_s5 }
  0xc4   : > { %p4532_p6 = pnand %p4530_p4, %p5661_p13 }
  0xc6   : > { %p4533_p7 = pneg %p4532_p6 }
  0xc8   : > { %p4538_p11 = pnand %p4536_p0, %p4533_p7 }
  0xca   : > { %4541 = shalt.err (!%p4538_p11)
}
  0xcb   : > { %s4542_s1 = scalar_lea.vmem %s511_s18, 32  ;;  %p4550_p2 = scmp.lt.s32.totalorder %s511_s18, %s511_s18 }
  0xcc   : > { %p4543_p5 = scmp.ne.s32.totalorder %s511_s18, %s4542_s1  ;;  %p4551_p12 = scmp.lt.s32.totalorder %s4542_s1, %s4542_s1 }
  0xce   : > { %p4545_p9 = pnand %p4543_p5, %p5661_p13  ;;  %p4552_p1 = por %p4551_p12, %p4550_p2 }
  0xd0   : > { %p4546_p8 = pneg %p4545_p9 }
  0xd2   : > { %p4553_p3 = pnand %p4552_p1, %p4546_p8 }
  0xd4   : > { %4556 = shalt.err (!%p4553_p3)
}
  0xd5   : > { %p5664_p4 = scmp.ne.s32.totalorder %s5651_s23, 0  ;;  %s4557_s13 = scalar_lea.hbm %s5596_s6, 64 }
  0xd6   : > { %p4558_p6 = scmp.ne.s32.totalorder %s5596_s6, %s4557_s13  ;;  %p4564_p3 = scmp.lt.u32.totalorder %s4557_s13, %s5596_s6 }
  0xd7   : > { %4178 = dma.hbm_to_vmem [thread:$0]  (!%p5664_p4), %s5595_s5, 32, %s511_s18, [#allocation9]  }
  0xd8   : > { %p4560_p7 = pnand %p4558_p6, %p5661_p13 }
  0xda   : > { %p4561_p0 = pneg %p4560_p7 }
  0xdc   : > { %p4566_p11 = pnand %p4564_p3, %p4561_p0 }
  0xde   : > { %4569 = shalt.err (!%p4566_p11)
}
  0xdf   : > { %s4570_s10 = scalar_lea.vmem %s522_s4, 64  ;;  %p4578_p2 = scmp.lt.s32.totalorder %s522_s4, %s522_s4 }
  0xe0   : > { %p4571_p5 = scmp.ne.s32.totalorder %s522_s4, %s4570_s10  ;;  %p4579_p12 = scmp.lt.s32.totalorder %s4570_s10, %s4570_s10 }
  0xe2   : > { %p4573_p9 = pnand %p4571_p5, %p5661_p13  ;;  %p4580_p1 = por %p4579_p12, %p4578_p2 }
  0xe4   : > { %p4574_p8 = pneg %p4573_p9 }
  0xe6   : > { %p4581_p10 = pnand %p4580_p1, %p4574_p8 }
  0xe8   : > { %4584 = shalt.err (!%p4581_p10)
}
  0xe9   : > { %4181 = dma.hbm_to_vmem [thread:$0]  (!%p5664_p4), %s5596_s6, 64, %s522_s4, [#allocation12]  }
  0xea   : > { %s5115_s21 = scalar_lea.hbm %s5605_s15, %s4900_s30  ;;  %s652_s9 = scalar_lea.vmem [#allocation17], %s4897_s17 }
  0xeb   : > { %s659_s26 = sshll.u32 %s652_s9, 4  ;;  %s4585_s23 = scalar_lea.hbm %s5115_s21, 256  ;;  %s5118_s26 = int_to_ptr.vmem [resolvable:$true] %s659_s26 }
  0xec   : > { %p4586_p10 = scmp.ne.s32.totalorder %s5115_s21, %s4585_s23  ;;  %p5665_p13 = scmp.ne.s32.totalorder %s5658_s3, 0 }
  0xed   : > { %s4590_s16 = scalar_lea.hbm %s5605_s15, 512  ;;  %p4591_p4 = scmp.lt.u32.totalorder %s5115_s21, %s5605_s15 }
  0xee   : > { %p4588_p6 = pnand %p4586_p10, %p5665_p13  ;;  %p4592_p0 = scmp.lt.u32.totalorder %s4590_s16, %s4585_s23 }
  0xef   : > { %p4594_p11 = scmp.lt.u32.totalorder %s4585_s23, %s5115_s21 }
  0xf0   : > { %p4589_p7 = pneg %p4588_p6  ;;  %p4593_p3 = por %p4592_p0, %p4591_p4 }
  0xf2   : > { %p4595_p5 = por %p4594_p11, %p4593_p3 }
  0xf4   : > { %p4596_p9 = pnand %p4595_p5, %p4589_p7 }
  0xf6   : > { %4599 = shalt.err (!%p4596_p9)
}
  0xf7   : > { %s4600_s17 = scalar_lea.vmem %s5118_s26, 256  ;;  %s4705_s12 = smov [#allocation17]  }
  0xf8   : > { %p4601_p8 = scmp.ne.s32.totalorder %s5118_s26, %s4600_s17  ;;  %s4605_s7 = sshll.u32 %s4705_s12, 4  ;;  %s4606_s7 = int_to_ptr.vmem [resolvable:$false] %s4605_s7 }
  0xf9   : > { %s4607_s10 = scalar_lea.vmem %s4606_s7, 512  ;;  %p4608_p1 = scmp.lt.s32.totalorder %s5118_s26, %s4606_s7 }
  0xfa   : > { %p4603_p2 = pnand %p4601_p8, %p5665_p13  ;;  %p4609_p10 = scmp.lt.s32.totalorder %s4607_s10, %s4600_s17 }
  0xfc   : > { %p4604_p12 = pneg %p4603_p2  ;;  %p4610_p6 = por %p4609_p10, %p4608_p1 }
  0xfe   : > { %p4611_p4 = pnand %p4610_p6, %p4604_p12 }
 0x100   : > { %4614 = shalt.err (!%p4611_p4)
}
 0x101   : > { %p5666_p7 = scmp.ne.s32.totalorder %s5657_s22, 0  ;;  %p5667_p13 = scmp.ne.s32.totalorder %s5650_s20, 0 }
 0x102   : > { %p5668_p0 = scmp.eq.s32.totalorder (!%p5667_p13), %s4829_s28, 0 }
 0x103   : > { %4197 = dma.hbm_to_vmem [thread:$0]  (!%p5666_p7), %s5115_s21, 256, %s5118_s26, %s4919_s0, %s5660_s29, %s5660_s29, %s4698_s27  }
 0x104   : > { %679 = sbr.rel (%p5667_p13) target bundleno = 7607 (0x1db7), region = 88 }
 0x10b   : > { %4658 = dma.done.wait (%p5668_p0), [#allocation6], 256   ;;  %p5669_p3 = pmov %p5668_p0 }
 0x10c   : > { %p5670_p11 = pmov %p5668_p0 }
 0x10d   : > { %4660 = vsyncadd (%p5669_p3), [#allocation6], 4294967040 }
 0x10e   : > { %4662 = dma.done.wait (%p5670_p11), [#allocation9], 64   ;;  %p5671_p5 = pmov %p5668_p0 }
 0x10f   : > { %p5672_p9 = pmov %p5668_p0 }
 0x110   : > { %4664 = vsyncadd (%p5671_p5), [#allocation9], 4294967232 }
 0x111   : > { %4666 = dma.done.wait (%p5672_p9), [#allocation12], 64   ;;  %p5673_p8 = pmov %p5668_p0 }
 0x112   : > { %s5674_s20 = sld [smem:[#allocation27_spill]]  ;;  %s697_s22 = sand.u32 1, %s4829_s28  }
 0x113   : > { %4668 = vsyncadd (%p5673_p8), [#allocation12], 4294967232  ;;  %s699_s0 = sand.u32 1, %s4683_s25   ;;  %s698_s27 = scalar_lea.sflag [#allocation6], %s697_s22 }
 0x114   : > { %s5161_s3 = sshll.u32 %s699_s0, 4 }
 0x118   : > { %p5675_p2 = scmp.ne.s32.totalorder %s5674_s20, 0 }
 0x11a   : > { %4670 = dma.done.wait (%p5675_p2), %s698_s27, 1280  }
 0x11b   : > { %4672 = vsyncadd (%p5675_p2), %s698_s27, 4294966016  ;;  %p828_p12 = scmp.lt.s32.totalorder %s4829_s28, 1  ;;  %s5676_s9 = sld [smem:[#allocation32_spill]] }
 0x11c   : > { %s5677_s4 = sld [smem:[#allocation34_spill]]  ;;  %s5678_s17 = sld [smem:[#allocation36_spill]] }
 0x11d   : > { %s829_s18 = scalar_select %p828_p12, %s4829_s28, 1 }
 0x11e   : > { %s5679_s20 = sld [smem:[#allocation37_spill]]  ;;  %s5680_s21 = sld [smem:[#allocation38_spill]] }
 0x11f   : > { %s3686_s1 = sshll.u32 %s829_s18, 5  ;;  %s3689_s24 = sshll.u32 %s829_s18, 4 }
 0x120   : > { %s4138_s0 = smul.u32 24, %s829_s18  ;;  %s710_s29 = scalar_lea.vmem [#allocation14], %s5161_s3 }
 0x121   : > { %s5173_s26 = scalar_lea.vmem %s5676_s9, %s3686_s1  ;;  %s719_s23 = scalar_lea.vmem [#allocation15], %s5161_s3 }
 0x122   : > { %s5178_s16 = scalar_lea.vmem %s5677_s4, %s3686_s1  ;;  %s5183_s12 = scalar_lea.vmem %s5678_s17, %s3686_s1 }
 0x123   : > { %s728_s13 = scalar_lea.vmem [#allocation16], %s5161_s3  ;;  %s737_s4 = scalar_lea.vmem [#allocation17], %s5161_s3 }
 0x124   : > { %s5188_s22 = scalar_lea.vmem %s5679_s20, %s3689_s24  ;;  %s5193_s9 = scalar_lea.vmem %s5680_s21, %s4138_s0 }
 0x125   : > { %p5681_p1 = scmp.ne.s32.totalorder %s4829_s28, 0 }
 0x126   : > { %v858_v0 = vld [vmem:[#allocation5] sm:$0xff] (!%p5681_p1)  ;;  %vm860_vm0 = vcmask (!%p5681_p1), 261120   ;;  %v859_v1 = vld [vmem:[#allocation5 + $0x8] sm:$0xff] (!%p5681_p1)  ;;  %v4706_v2 = vmov (!%p5681_p1), 0.0  }
 0x127   : > { %857 = sbr.rel (%p5681_p1) target bundleno = 302 (0x12e), region = 128  ;;  %861 = vst.msk [vmem:[#allocation2] sm:$0xff] (!%p5681_p1), %vm860_vm0, %v858_v0  ;;  %862 = vst.msk [vmem:[#allocation2 + $0x8] sm:$0xff] (!%p5681_p1), %vm860_vm0, %v859_v1 }
 0x128   : > { %863 = vst.msk [vmem:[#allocation3] sm:$0xff] (!%p5681_p1), %vm860_vm0, %v4706_v2  ;;  %864 = vst.msk [vmem:[#allocation3 + $0x8] sm:$0xff] (!%p5681_p1), %vm860_vm0, %v4706_v2 }
 0x129   : > { %865 = vst.msk [vmem:[#allocation4] sm:$0xff] (!%p5681_p1), %vm860_vm0, %v4706_v2  ;;  %866 = vst.msk [vmem:[#allocation4 + $0x8] sm:$0xff] (!%p5681_p1), %vm860_vm0, %v4706_v2 }
 0x12e PF: > { %v870_v3 = vld [vmem:[#allocation2] sm:$0xff]  ;;  %v871_v4 = vld [vmem:[#allocation2 + $0x8] sm:$0xff]  ;;  %s5682_s24 = sld [smem:[#allocation29_spill]]  ;;  %vm878_vm1 = vcmask 130048   ;;  %s5684_s7 = scalar_lea.vmem [#allocation13], %s5161_s3  ;;  %v4707_v10 = vmov 0.0   ;;  %v1109_v28 = vlaneseq }
 0x12f   : > { %v4075_v6 = vpack.c.bf16 %v871_v4, %v870_v3  ;;  %v4265_v8 = vld [vmem:[%s5684_s7] sm:$0xff]   ;;  %s5685_s19 = smov %s5684_s7  ;;  %vm4708_vm2 = vmmov 0   ;;  %v4709_v17 = vmov 0   ;;  %vm1001_vm3 = vcmask 261120   ;;  %s5686_s1 = sld [smem:[#allocation31_spill]]  ;;  %v5261_v32 = vld [vmem:[%s5193_s9] sm:$0xff] }
 0x130   : > { %v4266_v12 = vld [vmem:[%s5173_s26 + $0x4] ss:$8 sps:$4 sm:$0xff]   ;;  %v4268_v13 = vld [vmem:[%s5173_s26] ss:$8 sps:$4 sm:$0xff]   ;;  %v4270_v15 = vld [vmem:[%s5173_s26 + $0x14] ss:$8 sps:$4 sm:$0xff]   ;;  %1037 = vmatprep.mubr.bf16.mxu1 %v4709_v17  ;;  %4264 = vset.pattern.permute.xlu0 %v4709_v17 }
 0x131   : > { %4076 = vmatprep.subr.bf16.mxu0 %v4075_v6  ;;  %v4269_v14 = vld [vmem:[%s5685_s19 + $0x8] sm:$0xff]   ;;  %1005 = vmatprep.subr.bf16.mxu1 %v4266_v12  ;;  %v4272_v16 = vld [vmem:[%s5173_s26 + $0x10] ss:$8 sps:$4 sm:$0xff]   ;;  %v5252_v29 = vshrl.u32 %v1109_v28, 7  ;;  %vm1156_vm4 = vcmask 523264   ;;  %vm1201_vm5 = vcmask 31744  }
 0x132   : > { %4078 = vmatpush3.bf16.msra.mxu0 %v4075_v6  ;;  %1006 = vmatpush1.bf16.msra.mxu1 %v4268_v13  ;;  %s4710_s20 = smov 64   ;;  %v1224_v2 = vld [vmem:[#allocation10] sm:$0x3]  ;;  %vm1229_vm6 = vcmask 1041408   ;;  %vm2952_vm12 = vcmask 15360   ;;  %p3672_p10 = scmp.ne.s32.totalorder %s4829_s28, 1 }
 0x133   : > { %3825 = vmatprep.subr.bf16.mxu0 %v4707_v10  ;;  %1007 = vmatprep.subr.bf16.mxu1 %v4270_v15  ;;  %v5255_v30 = vsub.s32 0, %v5252_v29  ;;  %v5258_v31 = vsub.s32 1, %v5252_v29  ;;  %v1231_v3 = vsel %vm1229_vm6, %v1224_v2, 0  ;;  %v4278_v13 = vld [vmem:[%s710_s29 + $0x8] sm:$0xff]   ;;  %v5303_v15 = vld [vmem:[#allocation3 + $0x8] sm:$0xff] }
 0x134   : > { %s5683_s8 = smov %s5682_s24  ;;  %v874_v5 = vld [vmem:[%s5682_s24] sm:$0xff]  ;;  %4263 = vset.pattern.permute.xlu1 %v4709_v17  ;;  %v1357_v17 = vsub.s32 5, %v5252_v29 }
 0x135   : > { %3819 = vmatprep.mubr.msk.f32.mxu0 %vm878_vm1, %v874_v5  ;;  %v875_v7 = vld [vmem:[%s5683_s8 + $0x8] sm:$0xff]  ;;  %v876_v9 = vld [vmem:[%s5683_s8 + $0x10] sm:$0xff]  ;;  %v877_v11 = vld [vmem:[%s5683_s8 + $0x18] sm:$0xff]  ;;  %v1112_v35 = vrot.slane %v5261_v32, %v5255_v30  ;;  %v1118_v37 = vrot.slane %v5261_v32, %v5258_v31 }
 0x136   : > { %3820 = vmatmul.mubr.msk.f32.vlgmr.msra.gmra.mrb[0].mxu0 %vm878_vm1, %v875_v7  ;;  %1008 = vmatpush1.bf16.msra.mxu1 %v4272_v16  ;;  %v4273_v23 = vld [vmem:[%s5686_s1] sm:$0xff]   ;;  %v4274_v25 = vld [vmem:[%s5686_s1 + $0x8] sm:$0xff]   ;;  %v4275_v26 = vld [vmem:[%s5686_s1 + $0x10] sm:$0xff]  }
 0x137   : > { %3822 = vmatprep.mubr.msk.f32.mxu0 %vm878_vm1, %v876_v9  ;;  %3826 = vmatpush3.bf16.msra.mxu0 %v4265_v8  ;;  %v4276_v27 = vld [vmem:[%s5686_s1 + $0x18] sm:$0xff]  }
 0x138   : > { %3827 = vmatprep.subr.bf16.mxu0 %v4707_v10  ;;  %3833 = vmatprep.subr.bf16.mxu1 %v4707_v10 }
 0x13a   : > { %3823 = vmatmul.mubr.msk.f32.gmra.mrb[2].mxu0 %vm878_vm1, %v877_v11  ;;  %v4277_v11 = vld [vmem:[%s710_s29] sm:$0xff]  }
 0x13b   : > { %3828 = vmatpush3.bf16.msra.mxu0 %v4269_v14  ;;  %3829 = vmatprep.mubr.msk.bf16.mxu0 %vm4708_vm2, %v4707_v10  ;;  %v5301_v14 = vld [vmem:[#allocation3] sm:$0xff] }
 0x13c   : > { %3845 = vmatprep.subr.bf16.mxu0 %v4707_v10  ;;  %v1288_v16 = vpack.c.bf16 %v5303_v15, %v5301_v14 }
 0x209   : > { %v3821_v18 = vpop.f32.mrb[0].mxu0 }
 0x20a   : > { %v957_v19 = vpop.f32.mrb[1].mxu0 }
 0x20b   : > { %v1052_v20 = vpack.c.bf16 %v3821_v18, %v957_v19  ;;  %v1358_v18 = vrot.slane %v5261_v32, %v1357_v17 }
 0x20d   : > { %v3824_v21 = vpop.f32.mrb[2].mxu0  ;;  %3830 = vmatmul.mubr.msk.bf16.vlgmr.msra.gmra.mrb[4].mxu0 %vm1001_vm3, %v1052_v20 }
 0x20e   : > { %v967_v22 = vpop.f32.mrb[3].mxu0  ;;  %3847 = vmatprep.mubr.msk.bf16.mxu0 %vm4708_vm2, %v4707_v10  ;;  %3846 = vmatpush3.bf16.msra.mxu0 %v1231_v3 }
 0x20f   : > { %v980_v24 = vpack.c.bf16 %v3824_v21, %v967_v22  ;;  %3851 = vmatprep.subr.bf16.mxu0 %v4707_v10 }
 0x211   : > { %3614 = vmatmul.mubr.msk.bf16.vlgmr.msra.gmra.mrb[0].mxu1 %vm1001_vm3, %v980_v24 }
 0x212   : > { %3834 = vmatpush3.bf16.msra.mxu1 %v4273_v23  ;;  %3841 = vmatprep.mubr.msk.bf16.mxu1 %vm4708_vm2, %v4707_v10 }
 0x213   : > { %3835 = vmatprep.subr.bf16.mxu1 %v4707_v10 }
 0x216   : > { %3836 = vmatpush3.bf16.msra.mxu1 %v4274_v25 }
 0x217   : > { %3837 = vmatprep.subr.bf16.mxu1 %v4707_v10 }
 0x21a   : > { %3838 = vmatpush3.bf16.msra.mxu1 %v4275_v26  ;;  %v4711_v26 = vmov 0.03125|0.03125  }
 0x21b   : > { %3839 = vmatprep.subr.bf16.mxu1 %v4707_v10 }
 0x21e   : > { %3840 = vmatpush3.bf16.msra.mxu1 %v4276_v27 }
 0x21f   : > { %4079 = vmatprep.subr.bf16.mxu1 %v4711_v26 }
 0x2e0   : > { %v5263_v33 = vpop.f32.mrb[4].mxu0 }
 0x2e1   : > { %v3831_v34 = vpop.f32.mrb[5].mxu0  ;;  %v5277_v43 = vadd.f32 %v1118_v37, %v5263_v33 }
 0x2e2   : > { %v5267_v36 = vpop.f32.mrb[6].mxu0 }
 0x2e3   : > { %v3832_v38 = vpop.f32.mrb[7].mxu0  ;;  %v5280_v44 = vadd.f32 %v1118_v37, %v5267_v36 }
 0x2e4   : > { %v5271_v39 = vpop.f32.mrb[0].mxu1 }
 0x2e5   : > { %v1113_v40 = vadd.f32 %v1112_v35, %v5271_v39  ;;  %v1041_v41 = vpop.f32.mrb[1].mxu1 }
 0x2e6   : > { %v5274_v42 = vpop.f32.mrb[2].mxu1 }
 0x2e7   : > { %v1114_v45 = vadd.f32 %v1112_v35, %v5274_v42  ;;  %v1045_v46 = vpop.f32.mrb[3].mxu1  ;;  %v1121_v47 = vmul.f32 %v5277_v43, %v1113_v40 }
 0x2e9   : > { %v1122_v48 = vmul.f32 %v5280_v44, %v1114_v45 }
 0x2eb   : > { %v1131_v49 = vpack.c.bf16 %v1122_v48, %v1121_v47 }
 0x2ed   : > { %3842 = vmatmul.mubr.msk.bf16.vlgmr.msra.gmra.mrb[4].mxu1 %vm1156_vm4, %v1131_v49 }
 0x2ee   : > { %4080 = vmatpush3.bf16.msra.mxu1 %v4711_v26 }
 0x2ef   : > { %4081 = vmatprep.subr.bf16.mxu1 %v4711_v26 }
 0x2f2   : > { %4082 = vmatpush3.bf16.msra.mxu1 %v4711_v26 }
 0x2f3   : > { %3881 = vmatprep.subr.bf16.mxu1 %v4707_v10 }
 0x3c0   : > { %v1194_v50 = vpop.f32.mrb[4].mxu1 }
 0x3c1   : > { %v3843_v51 = vpop.f32.mrb[5].mxu1  ;;  %v1202_v52 = vsel %vm1201_vm5, %v1194_v50, -inf }
 0x3c2   : > { %1203 = vmax.xlane.f32.xlu0 %v1202_v52  ;;  %v1197_v53 = vpop.f32.mrb[6].mxu1 }
 0x3c3   : > { %v3844_v54 = vpop.f32.mrb[7].mxu1  ;;  %v1205_v55 = vsel %vm1201_vm5, %v1197_v53, -inf }
 0x3c6   : > { %1206 = vmax.xlane.f32.xlu0 %v1205_v55 }
 0x3dc   : > { %1276 = vrot.lane.b32.xlu0 %v1041_v41, %s4710_s20 }
 0x3e0   : > { %1360 = vrot.lane.b32.xlu0 %v1358_v18, %s4710_s20 }
 0x44f   : > { %v1204_v56 = vpop.xlane.xlu0 %1203 }
 0x450   : > { %v1208_v57 = vsub.f32 %v1194_v50, %v1204_v56 }
 0x452   : > { %v1210_v58 = vmul.f32 1.442695, %v1208_v57 }
 0x453   : > { %v1207_v59 = vpop.xlane.xlu0 %1206 }
 0x454   : > { %4295 = vpow2.f32 %v1210_v58  ;;  %v1209_v60 = vsub.f32 %v1197_v53, %v1207_v59 }
 0x456   : > { %v1212_v61 = vmul.f32 1.442695, %v1209_v60 }
 0x457   : > { %v1277_v37 = vpop.permute.xlu0 %1276 }
 0x458   : > { %4297 = vpow2.f32 %v1212_v61  ;;  %v1282_v40 = vadd.f32 %v1277_v37, %v5263_v33 }
 0x45e   : > { %v4296_v62 = vpop.eup %4295 }
 0x45f   : > { %v1214_v63 = vsel %vm1201_vm5, %v4296_v62, 0.0 }
 0x460   : > { %1215 = vadd.xlane.f32.xlu1 %v1214_v63 }
 0x462   : > { %v4298_v0 = vpop.eup %4297 }
 0x463   : > { %v1217_v1 = vsel %vm1201_vm5, %v4298_v0, 0.0 }
 0x464   : > { %1218 = vadd.xlane.f32.xlu1 %v1217_v1  ;;  %v1565_v1 = vsub.s32 6, %v5252_v29 }
 0x475   : > { %1278 = vrot.lane.b32.xlu1 %v1045_v46, %s4710_s20 }
 0x4ed   : > { %v1216_v4 = vpop.xlane.xlu1 %1215 }
 0x4ee   : > { %4299 = vrcp.f32 %v1216_v4 }
 0x4f1   : > { %v1219_v5 = vpop.xlane.xlu1 %1218 }
 0x4f2   : > { %4301 = vrcp.f32 %v1219_v5  ;;  %v1566_v5 = vrot.slane %v5261_v32, %v1565_v1 }
 0x4f5   : > { %v1279_v38 = vpop.permute.xlu1 %1278 }
 0x4f6   : > { %v1283_v45 = vadd.f32 %v1279_v38, %v5267_v36 }
 0x4f8   : > { %v4300_v6 = vpop.eup %4299 }
 0x4f9   : > { %v1222_v8 = vmul.f32 %v4300_v6, %v4296_v62  ;;  %v4279_v6 = vld [vmem:[%s719_s23] sm:$0xff]  }
 0x4fc   : > { %v4302_v7 = vpop.eup %4301 }
 0x4fd   : > { %v1223_v9 = vmul.f32 %v4302_v7, %v4298_v0  ;;  %v1575_v0 = vsub.s32 7, %v5252_v29  ;;  %v4280_v7 = vld [vmem:[%s719_s23 + $0x8] sm:$0xff]  }
 0x4ff   : > { %v1225_v12 = vpack.c.bf16 %v1223_v9, %v1222_v8  ;;  %v1576_v4 = vrot.slane %v5261_v32, %v1575_v0 }
 0x501   : > { %3848 = vmatmul.mubr.msk.bf16.vlgmr.msra.gmra.mrb[8].mxu0 %vm1201_vm5, %v1225_v12 }
 0x502   : > { %3852 = vmatpush3.bf16.msra.mxu0 %v4277_v11  ;;  %3855 = vmatprep.mubr.msk.bf16.mxu0 %vm4708_vm2, %v4707_v10 }
 0x503   : > { %3853 = vmatprep.subr.bf16.mxu0 %v4707_v10 }
 0x506   : > { %3854 = vmatpush3.bf16.msra.mxu0 %v4278_v13 }
 0x507   : > { %4083 = vmatprep.subr.bf16.mxu0 %v4711_v26 }
 0x509   : > { %3856 = vmatmul.mubr.msk.bf16.vlgmr.msra.gmra.mrb[12].mxu0 %vm1001_vm3, %v1288_v16 }
 0x50a   : > { %4084 = vmatpush3.bf16.msra.mxu0 %v4711_v26 }
 0x50b   : > { %4085 = vmatprep.subr.bf16.mxu0 %v4711_v26 }
 0x50e   : > { %4086 = vmatpush3.bf16.msra.mxu0 %v4711_v26 }
 0x50f   : > { %4087 = vmatprep.subr.bf16.mxu0 %v4711_v26 }
 0x5d4   : > { %v1267_v19 = vpop.f32.mrb[8].mxu0 }
 0x5d5   : > { %v3849_v20 = vpop.f32.mrb[9].mxu0  ;;  %v5315_v22 = vmul.f32 %v1267_v19, %v5277_v43  ;;  %v1361_v43 = vpop.permute.xlu0 %1360 }
 0x5d6   : > { %v1270_v21 = vpop.f32.mrb[10].mxu0 }
 0x5d7   : > { %v5318_v23 = vmul.f32 %v1270_v21, %v5280_v44  ;;  %v3850_v24 = vpop.f32.mrb[11].mxu0 }
 0x5d9   : > { %v1921_v25 = vpack.c.bf16 %v5318_v23, %v5315_v22 }
 0x5dc   : > { %v1338_v27 = vpop.f32.mrb[12].mxu0 }
 0x5dd   : > { %1347 = vrot.lane.b32.xlu1 %v1338_v27, %s4710_s20  ;;  %v3857_v28 = vpop.f32.mrb[13].mxu0 }
 0x5de   : > { %v1341_v34 = vpop.f32.mrb[14].mxu0 }
 0x5df   : > { %v3858_v35 = vpop.f32.mrb[15].mxu0 }
 0x5e1   : > { %1349 = vrot.lane.b32.xlu1 %v1341_v34, %s4710_s20 }
 0x64f   : > { %v1348_v41 = vpop.permute.xlu1 %1347 }
 0x650   : > { %v1353_v44 = vadd.f32 %v1348_v41, %v1282_v40 }
 0x652   : > { %v1363_v46 = vadd.f32 %v1361_v43, %v1353_v44 }
 0x653   : > { %v1350_v47 = vpop.permute.xlu1 %1349 }
 0x654   : > { %v1354_v48 = vadd.f32 %v1350_v47, %v1283_v45  ;;  %1367 = vrot.lane.b32.xlu1 %v1363_v46, %s4710_s20 }
 0x656   : > { %v1364_v49 = vadd.f32 %v1361_v43, %v1354_v48 }
 0x658   : > { %1369 = vrot.lane.b32.xlu0 %v1364_v49, %s4710_s20 }
 0x6c6   : > { %v1368_v50 = vpop.permute.xlu1 %1367 }
 0x6c7   : > { %3867 = vmatprep.mubr.msk.f32.mxu1 %vm1001_vm3, %v1368_v50 }
 0x6ca   : > { %v1370_v51 = vpop.permute.xlu0 %1369 }
 0x6cb   : > { %3868 = vmatmul.mubr.msk.f32.vlgmr.msra.gmra.mrb[8].mxu1 %vm1001_vm3, %v1370_v51 }
 0x6cc   : > { %3885 = vmatprep.mubr.msk.bf16.mxu1 %vm4708_vm2, %v4707_v10  ;;  %3882 = vmatpush3.bf16.msra.mxu1 %v4279_v6 }
 0x6cd   : > { %3883 = vmatprep.subr.bf16.mxu1 %v4707_v10 }
 0x6d0   : > { %3884 = vmatpush3.bf16.msra.mxu1 %v4280_v7 }
 0x6d1   : > { %4091 = vmatprep.subr.bf16.mxu1 %v4711_v26 }
 0x79e   : > { %v3869_v33 = vpop.f32.mrb[8].mxu1 }
 0x79f   : > { %1457 = vperm.xlu0 %4264, %v3869_v33   ;;  %v1441_v36 = vpop.f32.mrb[9].mxu1 }
 0x7a0   : > { %1452 = vperm.xlu1 %4263, %v1441_v36  }
 0x81e   : > { %v1458_v52 = vpop.permute.xlu0 %1457 }
 0x81f   : > { %v1453_v53 = vpop.permute.xlu1 %1452  ;;  %v1461_v55 = vsub.f32 %v1364_v49, %v1458_v52 }
 0x820   : > { %v1460_v54 = vsub.f32 %v1363_v46, %v1453_v53 }
 0x821   : > { %v1463_v57 = vmul.f32 %v1461_v55, %v1461_v55 }
 0x822   : > { %v1462_v56 = vmul.f32 %v1460_v54, %v1460_v54 }
 0x824   : > { %1466 = vrot.lane.b32.xlu1 %v1462_v56, %s4710_s20 }
 0x828   : > { %1468 = vrot.lane.b32.xlu1 %v1463_v57, %s4710_s20 }
 0x896   : > { %v1467_v58 = vpop.permute.xlu1 %1466 }
 0x897   : > { %3878 = vmatprep.mubr.msk.f32.mxu0 %vm1001_vm3, %v1467_v58 }
 0x89a   : > { %v1469_v59 = vpop.permute.xlu1 %1468 }
 0x89b   : > { %3879 = vmatmul.mubr.msk.f32.vlgmr.msra.gmra.mrb[16].mxu0 %vm1001_vm3, %v1469_v59 }
 0x89c   : > { %4088 = vmatpush3.bf16.msra.mxu0 %v4711_v26 }
 0x89d   : > { %4089 = vmatprep.subr.bf16.mxu0 %v4711_v26 }
 0x8a0   : > { %4090 = vmatpush3.bf16.msra.mxu0 %v4711_v26 }
 0x8a1   : > { %3911 = vmatprep.subr.bf16.mxu0 %v4707_v10 }
 0x96e   : > { %v3880_v60 = vpop.f32.mrb[16].mxu0 }
 0x96f   : > { %v1546_v61 = vadd.f32 1e-05, %v3880_v60  ;;  %v1540_v62 = vpop.f32.mrb[17].mxu0 }
 0x970   : > { %v1541_v63 = vadd.f32 1e-05, %v1540_v62 }
 0x971   : > { %4303 = vrsqrt.f32 %v1546_v61 }
 0x972   : > { %4305 = vrsqrt.f32 %v1541_v63 }
 0x97b   : > { %v4304_v2 = vpop.eup %4303 }
 0x97c   : > { %v4306_v3 = vpop.eup %4305  ;;  %1558 = vperm.xlu1 %4263, %v4304_v2  }
 0x97d   : > { %1553 = vperm.xlu0 %4264, %v4306_v3  }
 0x980   : > { %1578 = vrot.lane.b32.xlu1 %v1576_v4, %s4710_s20 }
 0x981   : > { %1568 = vrot.lane.b32.xlu0 %v1566_v5, %s4710_s20 }
 0x9fb   : > { %v1559_v8 = vpop.permute.xlu1 %1558 }
 0x9fc   : > { %v1554_v9 = vpop.permute.xlu0 %1553  ;;  %v1562_v11 = vmul.f32 %v1559_v8, %v1461_v55 }
 0x9fd   : > { %v1561_v12 = vmul.f32 %v1554_v9, %v1460_v54  ;;  %v4712_v9 = vmov -1.0  }
 0x9ff   : > { %v1579_v16 = vpop.permute.xlu1 %1578 }
 0xa00   : > { %v1569_v13 = vpop.permute.xlu0 %1568 }
 0xa01   : > { %v1571_v18 = vmul.f32 %v1569_v13, %v1561_v12  ;;  %v1572_v19 = vmul.f32 %v1569_v13, %v1562_v11 }
 0xa03   : > { %v1581_v20 = vadd.f32 %v1579_v16, %v1571_v18  ;;  %v1582_v21 = vadd.f32 %v1579_v16, %v1572_v19 }
 0xa05   : > { %v1585_v24 = vmul.f32 0.70710677, %v1581_v20  ;;  %v1586_v27 = vmul.f32 0.70710677, %v1582_v21  ;;  %v1583_v19 = vmul.f32 0.5, %v1581_v20  ;;  %v5374_v20 = vld [vmem:[%s5193_s9 + $0x8] sm:$0xff] }
 0xa07   : > { %v1591_v28 = vand.u32 2147483647, %v1585_v24  ;;  %v1592_v34 = vand.u32 2147483647, %v1586_v27  ;;  %vm1587_vm7 = vcmp.ge.f32.partialorder %v1585_v24, 0.0  ;;  %vm1588_vm8 = vcmp.ge.f32.partialorder %v1586_v27, 0.0 }
 0xa08   : > { %v1589_v11 = vsel %vm1587_vm7, 1.0, %v4712_v9  ;;  %v1590_v13 = vsel %vm1588_vm8, 1.0, %v4712_v9 }
 0xa09   : > { %v1593_v35 = vmul.f32 0.3275911, %v1591_v28  ;;  %v1594_v37 = vmul.f32 0.3275911, %v1592_v34  ;;  %v1619_v41 = vsub.f32 0.0, %v1591_v28  ;;  %v1620_v43 = vsub.f32 0.0, %v1592_v34 }
 0xa0b   : > { %v1595_v38 = vadd.f32 1.0, %v1593_v35  ;;  %v1596_v40 = vadd.f32 1.0, %v1594_v37  ;;  %v1621_v45 = vmul.f32 %v1619_v41, %v1591_v28  ;;  %v1622_v48 = vmul.f32 %v1620_v43, %v1592_v34 }
 0xa0c   : > { %v1584_v34 = vmul.f32 0.5, %v1582_v21  ;;  %v1645_v21 = vrot.slane %v5374_v20, %v5255_v30 }
 0xa0d   : > { %4307 = vrcp.f32 %v1595_v38  ;;  %v1623_v33 = vmul.f32 1.442695, %v1621_v45  ;;  %v1625_v52 = vmul.f32 1.442695, %v1622_v48  ;;  %v4281_v48 = vld [vmem:[%s5178_s16] sm:$0xff]  }
 0xa0e   : > { %4309 = vrcp.f32 %v1596_v40 }
 0xa0f   : > { %4311 = vpow2.f32 %v1623_v33 }
 0xa10   : > { %4313 = vpow2.f32 %v1625_v52 }
 0xa17   : > { %v4308_v44 = vpop.eup %4307 }
 0xa18   : > { %v4310_v46 = vpop.eup %4309  ;;  %v1601_v47 = vmul.f32 1.0614054, %v4308_v44 }
 0xa19   : > { %v1602_v49 = vmul.f32 1.0614054, %v4310_v46  ;;  %v4312_v3 = vpop.eup %4311 }
 0xa1a   : > { %v1603_v50 = vadd.f32 -1.4531521, %v1601_v47  ;;  %v4314_v5 = vpop.eup %4313 }
 0xa1b   : > { %v1604_v51 = vadd.f32 -1.4531521, %v1602_v49 }
 0xa1c   : > { %v1605_v36 = vmul.f32 %v4308_v44, %v1603_v50  ;;  %v4282_v50 = vld [vmem:[%s5178_s16 + $0x8] sm:$0xff]  }
 0xa1d   : > { %v1606_v53 = vmul.f32 %v4310_v46, %v1604_v51  ;;  %v4283_v51 = vld [vmem:[%s5178_s16 + $0x10] sm:$0xff]  }
 0xa1e   : > { %v1607_v54 = vadd.f32 1.4214138, %v1605_v36  ;;  %v4713_v36 = vmov 0.015625|0.015625  }
 0xa1f   : > { %v1608_v55 = vadd.f32 1.4214138, %v1606_v53  ;;  %v5401_v53 = vsub.s32 2, %v5252_v29 }
 0xa20   : > { %v1609_v56 = vmul.f32 %v4308_v44, %v1607_v54 }
 0xa21   : > { %v1610_v57 = vmul.f32 %v4310_v46, %v1608_v55 }
 0xa22   : > { %v1611_v58 = vadd.f32 -0.28449672, %v1609_v56 }
 0xa23   : > { %v1612_v59 = vadd.f32 -0.28449672, %v1610_v57  ;;  %v2001_v57 = vrot.slane %v5261_v32, %v5401_v53 }
 0xa24   : > { %v1613_v60 = vmul.f32 %v4308_v44, %v1611_v58 }
 0xa25   : > { %v1614_v61 = vmul.f32 %v4310_v46, %v1612_v59 }
 0xa26   : > { %v1615_v62 = vadd.f32 0.2548296, %v1613_v60 }
 0xa27   : > { %v1616_v63 = vadd.f32 0.2548296, %v1614_v61 }
 0xa28   : > { %v1617_v2 = vmul.f32 %v4308_v44, %v1615_v62 }
 0xa29   : > { %v1618_v4 = vmul.f32 %v4310_v46, %v1616_v63 }
 0xa2a   : > { %v1627_v6 = vmul.f32 %v4312_v3, %v1617_v2 }
 0xa2b   : > { %v1628_v7 = vmul.f32 %v4314_v5, %v1618_v4 }
 0xa2c   : > { %v1629_v8 = vsub.f32 1.0, %v1627_v6 }
 0xa2d   : > { %v1630_v12 = vsub.f32 1.0, %v1628_v7 }
 0xa2e   : > { %v1631_v16 = vmul.f32 %v1629_v8, %v1589_v11 }
 0xa2f   : > { %v1632_v18 = vmul.f32 %v1630_v12, %v1590_v13 }
 0xa30   : > { %v1633_v28 = vadd.f32 1.0, %v1631_v16 }
 0xa31   : > { %v1634_v35 = vadd.f32 1.0, %v1632_v18 }
 0xa32   : > { %v1635_v37 = vmul.f32 %v1633_v28, %v1583_v19 }
 0xa33   : > { %v1636_v38 = vmul.f32 %v1634_v35, %v1584_v34 }
 0xa35   : > { %v1641_v24 = vpack.c.bf16 %v1636_v38, %v1635_v37  ;;  %v4285_v38 = vld [vmem:[%s5183_s12] sm:$0xff]  }
 0xa37   : > { %1647 = vrot.lane.b32.xlu0 %v1641_v24, %s4710_s20  ;;  %v4286_v24 = vld [vmem:[%s5183_s12 + $0x8] sm:$0xff]  }
 0xaa9   : > { %v1648_v27 = vpop.permute.xlu0 %1647 }
 0xaaa   : > { %3886 = vmatmul.mubr.msk.bf16.vlgmr.msra.gmra.mrb[12].mxu1 %vm1001_vm3, %v1648_v27  ;;  %v4287_v27 = vld [vmem:[%s5183_s12 + $0x10] sm:$0xff]  }
 0xaab   : > { %4092 = vmatpush3.bf16.msra.mxu1 %v4711_v26 }
 0xaac   : > { %4093 = vmatprep.subr.bf16.mxu1 %v4711_v26 }
 0xaaf   : > { %4094 = vmatpush3.bf16.msra.mxu1 %v4711_v26 }
 0xab0   : > { %4095 = vmatprep.subr.bf16.mxu1 %v4713_v36 }
 0xb7d   : > { %v1698_v40 = vpop.f32.mrb[12].mxu1 }
 0xb7e   : > { %v1699_v41 = vadd.f32 %v1698_v40, %v1645_v21  ;;  %v3887_v43 = vpop.f32.mrb[13].mxu1  ;;  %v2196_v40 = vsub.s32 3, %v5252_v29 }
 0xb7f   : > { %v1701_v44 = vpop.f32.mrb[14].mxu1 }
 0xb80   : > { %v1705_v45 = vadd.f32 %v1699_v41, %v5301_v14  ;;  %v1702_v46 = vadd.f32 %v1701_v44, %v1645_v21  ;;  %v3888_v47 = vpop.f32.mrb[15].mxu1  ;;  %v4284_v14 = vld [vmem:[%s5178_s16 + $0x18] sm:$0xff]   ;;  %v2202_v41 = vsub.s32 4, %v5252_v29  ;;  %v2197_v43 = vrot.slane %v5261_v32, %v2196_v40 }
 0xb81   : > { %v4288_v21 = vld [vmem:[%s5183_s12 + $0x18] sm:$0xff]   ;;  %s5687_s12 = sld [smem:[#allocation30_spill]] }
 0xb82   : > { %v1706_v49 = vadd.f32 %v1702_v46, %v5303_v15  ;;  %3897 = vmatprep.mubr.msk.f32.mxu0 %vm1001_vm3, %v1705_v45 }
 0xb84   : > { %3898 = vmatmul.mubr.msk.f32.vlgmr.msra.gmra.mrb[18].mxu0 %vm1001_vm3, %v1706_v49 }
 0xb85   : > { %3912 = vmatpush3.bf16.msra.mxu0 %v4281_v48  ;;  %3919 = vmatprep.mubr.msk.bf16.mxu0 %vm4708_vm2, %v4707_v10 }
 0xb86   : > { %3913 = vmatprep.subr.bf16.mxu0 %v4707_v10 }
 0xb89   : > { %3914 = vmatpush3.bf16.msra.mxu0 %v4282_v50 }
 0xb8a   : > { %3915 = vmatprep.subr.bf16.mxu0 %v4707_v10 }
 0xb8d   : > { %3916 = vmatpush3.bf16.msra.mxu0 %v4283_v51 }
 0xb8e   : > { %3917 = vmatprep.subr.bf16.mxu0 %v4707_v10 }
 0xb91   : > { %3918 = vmatpush3.bf16.msra.mxu0 %v4284_v14 }
 0xb92   : > { %4103 = vmatprep.subr.bf16.mxu0 %v4713_v36 }
 0xb94   : > { %3920 = vmatmul.mubr.msk.bf16.vlgmr.msra.gmra.mrb[20].mxu0 %vm1156_vm4, %v1921_v25 }
 0xb95   : > { %4104 = vmatpush3.bf16.msra.mxu0 %v4713_v36 }
 0xb96   : > { %4105 = vmatprep.subr.bf16.mxu0 %v4713_v36 }
 0xb99   : > { %4106 = vmatpush3.bf16.msra.mxu0 %v4713_v36 }
 0xb9a   : > { %4107 = vmatprep.subr.bf16.mxu0 %v4713_v36 }
 0xb9d   : > { %4108 = vmatpush3.bf16.msra.mxu0 %v4713_v36 }
 0xb9e   : > { %4109 = vmatprep.subr.bf16.mxu0 %v4713_v36 }
 0xba1   : > { %4110 = vmatpush3.bf16.msra.mxu0 %v4713_v36 }
 0xba2   : > { %4111 = vmatprep.subr.bf16.mxu0 %v4711_v26 }
 0xc57   : > { %v3899_v15 = vpop.f32.mrb[18].mxu0 }
 0xc58   : > { %1795 = vperm.xlu0 %4264, %v3899_v15   ;;  %v1779_v33 = vpop.f32.mrb[19].mxu0 }
 0xc59   : > { %1790 = vperm.xlu1 %4263, %v1779_v33  }
 0xc5c   : > { %1950 = vrot.lane.b32.xlu0 %v5274_v42, %s4710_s20 }
 0xc5d   : > { %1948 = vrot.lane.b32.xlu1 %v5271_v39, %s4710_s20 }
 0xc67   : > { %v1991_v22 = vpop.f32.mrb[20].mxu0 }
 0xc68   : > { %v3921_v23 = vpop.f32.mrb[21].mxu0 }
 0xc69   : > { %v1994_v25 = vpop.f32.mrb[22].mxu0 }
 0xc6a   : > { %v3922_v52 = vpop.f32.mrb[23].mxu0 }
 0xcd7   : > { %v1796_v42 = vpop.permute.xlu0 %1795 }
 0xcd8   : > { %v5403_v39 = vsub.f32 %v1706_v49, %v1796_v42  ;;  %v1791_v54 = vpop.permute.xlu1 %1790 }
 0xcd9   : > { %v5405_v55 = vsub.f32 %v1705_v45, %v1791_v54  ;;  %v2203_v45 = vrot.slane %v5261_v32, %v2202_v41 }
 0xcda   : > { %v1801_v58 = vmul.f32 %v5403_v39, %v5403_v39 }
 0xcdb   : > { %v1800_v56 = vmul.f32 %v5405_v55, %v5405_v55  ;;  %v1951_v62 = vpop.permute.xlu0 %1950 }
 0xcdc   : > { %v1949_v59 = vpop.permute.xlu1 %1948  ;;  %v1995_v63 = vadd.f32 %v1994_v25, %v1951_v62 }
 0xcdd   : > { %v1992_v60 = vadd.f32 %v1991_v22, %v1949_v59  ;;  %3908 = vmatprep.mubr.msk.f32.mxu1 %vm1001_vm3, %v1800_v56 }
 0xcde   : > { %3909 = vmatmul.mubr.msk.f32.vlgmr.msra.gmra.mrb[10].mxu1 %vm1001_vm3, %v1801_v58  ;;  %v2003_v2 = vadd.f32 %v2001_v57, %v1995_v63 }
 0xcdf   : > { %v2002_v61 = vadd.f32 %v2001_v57, %v1992_v60  ;;  %4096 = vmatpush3.bf16.msra.mxu1 %v4713_v36 }
 0xce0   : > { %4097 = vmatprep.subr.bf16.mxu1 %v4713_v36 }
 0xce1   : > { %3939 = vmatprep.mubr.msk.f32.mxu1 %vm1156_vm4, %v2002_v61 }
 0xce3   : > { %4098 = vmatpush3.bf16.msra.mxu1 %v4713_v36 }
 0xce4   : > { %4099 = vmatprep.subr.bf16.mxu1 %v4713_v36 }
 0xce7   : > { %4100 = vmatpush3.bf16.msra.mxu1 %v4713_v36 }
 0xce8   : > { %4101 = vmatprep.subr.bf16.mxu1 %v4713_v36 }
 0xceb   : > { %4102 = vmatpush3.bf16.msra.mxu1 %v4713_v36 }
 0xcec   : > { %3961 = vmatprep.subr.bf16.mxu1 %v4707_v10 }
 0xcee   : > { %3940 = vmatmul.mubr.msk.f32.vlgmr.msra.gmra.mrb[16].mxu1 %vm1156_vm4, %v2003_v2 }
 0xcef   : > { %3969 = vmatprep.mubr.msk.bf16.mxu1 %vm4708_vm2, %v4707_v10  ;;  %3962 = vmatpush3.bf16.msra.mxu1 %v4285_v38 }
 0xcf0   : > { %3963 = vmatprep.subr.bf16.mxu1 %v4707_v10 }
 0xcf3   : > { %3964 = vmatpush3.bf16.msra.mxu1 %v4286_v24 }
 0xcf4   : > { %3965 = vmatprep.subr.bf16.mxu1 %v4707_v10 }
 0xcf7   : > { %3966 = vmatpush3.bf16.msra.mxu1 %v4287_v27 }
 0xcf8   : > { %3967 = vmatprep.subr.bf16.mxu1 %v4707_v10 }
 0xcfb   : > { %3968 = vmatpush3.bf16.msra.mxu1 %v4288_v21 }
 0xcfc   : > { %4115 = vmatprep.subr.bf16.mxu1 %v4711_v26 }
 0xdb1   : > { %v5420_v3 = vpop.f32.mrb[10].mxu1 }
 0xdb2   : > { %v5422_v4 = vpop.f32.mrb[11].mxu1 }
 0xdc1   : > { %v3941_v5 = vpop.f32.mrb[16].mxu1 }
 0xdc2   : > { %2092 = vperm.xlu0 %4264, %v3941_v5   ;;  %v2076_v6 = vpop.f32.mrb[17].mxu1 }
 0xdc3   : > { %2087 = vperm.xlu1 %4263, %v2076_v6  }
 0xe41   : > { %v2093_v7 = vpop.permute.xlu0 %2092 }
 0xe42   : > { %v2096_v8 = vsub.f32 %v2003_v2, %v2093_v7  ;;  %v2088_v11 = vpop.permute.xlu1 %2087 }
 0xe43   : > { %v2095_v12 = vsub.f32 %v2002_v61, %v2088_v11 }
 0xe44   : > { %v2098_v16 = vmul.f32 %v2096_v8, %v2096_v8 }
 0xe45   : > { %v2097_v13 = vmul.f32 %v2095_v12, %v2095_v12 }
 0xe47   : > { %3958 = vmatprep.mubr.msk.f32.mxu0 %vm1156_vm4, %v2097_v13 }
 0xe48   : > { %3959 = vmatmul.mubr.msk.f32.vlgmr.msra.gmra.mrb[24].mxu0 %vm1156_vm4, %v2098_v16 }
 0xe49   : > { %4112 = vmatpush3.bf16.msra.mxu0 %v4711_v26 }
 0xe4a   : > { %4113 = vmatprep.subr.bf16.mxu0 %v4711_v26 }
 0xe4d   : > { %4114 = vmatpush3.bf16.msra.mxu0 %v4711_v26 }
 0xf1b   : > { %v3960_v18 = vpop.f32.mrb[24].mxu0 }
 0xf1c   : > { %v2177_v19 = vadd.f32 1e-05, %v3960_v18  ;;  %v2171_v28 = vpop.f32.mrb[25].mxu0 }
 0xf1d   : > { %v2172_v34 = vadd.f32 1e-05, %v2171_v28 }
 0xf1e   : > { %4315 = vrsqrt.f32 %v2177_v19 }
 0xf1f   : > { %4317 = vrsqrt.f32 %v2172_v34 }
 0xf28   : > { %v4316_v35 = vpop.eup %4315 }
 0xf29   : > { %v4318_v37 = vpop.eup %4317  ;;  %2189 = vperm.xlu0 %4264, %v4316_v35  }
 0xf2a   : > { %2184 = vperm.xlu1 %4263, %v4318_v37  }
 0xfa8   : > { %v2190_v44 = vpop.permute.xlu0 %2189 }
 0xfa9   : > { %v2193_v46 = vmul.f32 %v2190_v44, %v2096_v8  ;;  %v2185_v47 = vpop.permute.xlu1 %2184 }
 0xfaa   : > { %v2192_v48 = vmul.f32 %v2185_v47, %v2095_v12 }
 0xfab   : > { %v2199_v49 = vmul.f32 %v2197_v43, %v2193_v46 }
 0xfac   : > { %v2198_v50 = vmul.f32 %v2197_v43, %v2192_v48 }
 0xfad   : > { %v2205_v51 = vadd.f32 %v2203_v45, %v2199_v49 }
 0xfae   : > { %v2204_v14 = vadd.f32 %v2203_v45, %v2198_v50 }
 0xfaf   : > { %v2209_v15 = vmul.f32 0.70710677, %v2205_v51  ;;  %v2207_v50 = vmul.f32 0.5, %v2205_v51 }
 0xfb0   : > { %v2208_v33 = vmul.f32 0.70710677, %v2204_v14 }
 0xfb1   : > { %v2215_v36 = vand.u32 2147483647, %v2209_v15  ;;  %vm2211_vm9 = vcmp.ge.f32.partialorder %v2209_v15, 0.0  ;;  %v2272_v15 = vrot.slane %v5374_v20, %v2196_v40 }
 0xfb2   : > { %v2214_v22 = vand.u32 2147483647, %v2208_v33  ;;  %vm2210_vm10 = vcmp.ge.f32.partialorder %v2208_v33, 0.0  ;;  %v2213_v45 = vsel %vm2211_vm9, 1.0, %v4712_v9 }
 0xfb3   : > { %v2217_v23 = vmul.f32 0.3275911, %v2215_v36  ;;  %v2243_v54 = vsub.f32 0.0, %v2215_v36  ;;  %v2212_v48 = vsel %vm2210_vm10, 1.0, %v4712_v9 }
 0xfb4   : > { %v2216_v25 = vmul.f32 0.3275911, %v2214_v22  ;;  %v2242_v56 = vsub.f32 0.0, %v2214_v22 }
 0xfb5   : > { %v2219_v52 = vadd.f32 1.0, %v2217_v23  ;;  %v2245_v57 = vmul.f32 %v2243_v54, %v2215_v36 }
 0xfb6   : > { %v2218_v42 = vadd.f32 1.0, %v2216_v25  ;;  %v2244_v60 = vmul.f32 %v2242_v56, %v2214_v22  ;;  %v2206_v22 = vmul.f32 0.5, %v2204_v14  ;;  %v4345_v56 = vld [vmem:[#allocation2] sm:$0xff] }
 0xfb7   : > { %4319 = vrcp.f32 %v2219_v52  ;;  %v2248_v63 = vmul.f32 1.442695, %v2245_v57 }
 0xfb8   : > { %4321 = vrcp.f32 %v2218_v42  ;;  %v2246_v6 = vmul.f32 1.442695, %v2244_v60 }
 0xfb9   : > { %4323 = vpow2.f32 %v2248_v63 }
 0xfba   : > { %4325 = vpow2.f32 %v2246_v6 }
 0xfc1   : > { %v4320_v32 = vpop.eup %4319 }
 0xfc2   : > { %v4322_v58 = vpop.eup %4321  ;;  %v2225_v59 = vmul.f32 1.0614054, %v4320_v32 }
 0xfc3   : > { %v2224_v61 = vmul.f32 1.0614054, %v4322_v58  ;;  %v4324_v38 = vpop.eup %4323 }
 0xfc4   : > { %v2227_v62 = vadd.f32 -1.4531521, %v2225_v59  ;;  %v4326_v27 = vpop.eup %4325  ;;  %v4346_v59 = vld [vmem:[#allocation2 + $0x8] sm:$0xff] }
 0xfc5   : > { %v2226_v2 = vadd.f32 -1.4531521, %v2224_v61 }
 0xfc6   : > { %v2229_v5 = vmul.f32 %v4320_v32, %v2227_v62 }
 0xfc7   : > { %v2228_v7 = vmul.f32 %v4322_v58, %v2226_v2 }
 0xfc8   : > { %v2231_v8 = vadd.f32 1.4214138, %v2229_v5 }
 0xfc9   : > { %v2230_v11 = vadd.f32 1.4214138, %v2228_v7 }
 0xfca   : > { %v2233_v12 = vmul.f32 %v4320_v32, %v2231_v8 }
 0xfcb   : > { %v2232_v13 = vmul.f32 %v4322_v58, %v2230_v11 }
 0xfcc   : > { %v2235_v16 = vadd.f32 -0.28449672, %v2233_v12 }
 0xfcd   : > { %v2234_v18 = vadd.f32 -0.28449672, %v2232_v13 }
 0xfce   : > { %v2237_v19 = vmul.f32 %v4320_v32, %v2235_v16 }
 0xfcf   : > { %v2236_v28 = vmul.f32 %v4322_v58, %v2234_v18 }
 0xfd0   : > { %v2239_v34 = vadd.f32 0.2548296, %v2237_v19  ;;  %v4714_v19 = vmov 0.0|0.0  }
 0xfd1   : > { %v2238_v35 = vadd.f32 0.2548296, %v2236_v28  ;;  %4119 = vmatprep.subr.bf16.mxu0 %v4714_v19  ;;  %v2536_v28 = vrot.slane %v5374_v20, %v2202_v41  ;;  %v2545_v41 = vld [vmem:[#allocation8] sm:$0x3] }
 0xfd2   : > { %v2241_v37 = vmul.f32 %v4320_v32, %v2239_v34 }
 0xfd3   : > { %v2240_v24 = vmul.f32 %v4322_v58, %v2238_v35  ;;  %v2542_v35 = vrot.slane %v5374_v20, %v1357_v17  ;;  %v4290_v17 = vld [vmem:[%s5188_s22 + $0x8] sm:$0xff]  }
 0xfd4   : > { %v2251_v21 = vmul.f32 %v4324_v38, %v2241_v37 }
 0xfd5   : > { %v2250_v43 = vmul.f32 %v4326_v27, %v2240_v24 }
 0xfd6   : > { %v2253_v44 = vsub.f32 1.0, %v2251_v21 }
 0xfd7   : > { %v2252_v46 = vsub.f32 1.0, %v2250_v43 }
 0xfd8   : > { %v2255_v47 = vmul.f32 %v2253_v44, %v2213_v45 }
 0xfd9   : > { %v2254_v49 = vmul.f32 %v2252_v46, %v2212_v48  ;;  %v4289_v46 = vld [vmem:[%s5188_s22] sm:$0xff]  }
 0xfda   : > { %v2257_v36 = vadd.f32 1.0, %v2255_v47 }
 0xfdb   : > { %v2256_v23 = vadd.f32 1.0, %v2254_v49 }
 0xfdc   : > { %v2259_v25 = vmul.f32 %v2257_v36, %v2207_v50  ;;  %v2627_v50 = vrot.slane %v5374_v20, %v1565_v1 }
 0xfdd   : > { %v2258_v52 = vmul.f32 %v2256_v23, %v2206_v22 }
 0xfdf   : > { %v2268_v42 = vpack.c.bf16 %v2259_v25, %v2258_v52 }
 0xfe1   : > { %3970 = vmatmul.mubr.msk.bf16.vlgmr.msra.gmra.mrb[20].mxu1 %vm1156_vm4, %v2268_v42  ;;  %v1875_v42 = vadd.f32 1e-05, %v5422_v4 }
 0xfe2   : > { %4116 = vmatpush3.bf16.msra.mxu1 %v4711_v26 }
 0xfe3   : > { %4117 = vmatprep.subr.bf16.mxu1 %v4711_v26 }
 0xfe6   : > { %4118 = vmatpush3.bf16.msra.mxu1 %v4711_v26 }
 0xfe7   : > { %4122 = vmatprep.subr.bf16.mxu1 %v4714_v19 }
0x10b4   : > { %v2334_v33 = vpop.f32.mrb[20].mxu1 }
0x10b5   : > { %v2335_v51 = vadd.f32 %v2334_v33, %v2272_v15  ;;  %v3971_v54 = vpop.f32.mrb[21].mxu1 }
0x10b6   : > { %v2337_v14 = vpop.f32.mrb[22].mxu1 }
0x10b7   : > { %v2341_v32 = vadd.f32 %v4345_v56, %v2335_v51  ;;  %v2338_v57 = vadd.f32 %v2337_v14, %v2272_v15  ;;  %v3972_v58 = vpop.f32.mrb[23].mxu1  ;;  %v1900_v14 = vrot.slane %v5374_v20, %v5258_v31 }
0x10b9   : > { %v2342_v60 = vadd.f32 %v4346_v59, %v2338_v57  ;;  %3981 = vmatprep.mubr.msk.f32.mxu0 %vm1001_vm3, %v2341_v32 }
0x10bb   : > { %3982 = vmatmul.mubr.msk.f32.vlgmr.msra.gmra.mrb[26].mxu0 %vm1001_vm3, %v2342_v60 }
0x10bc   : > { %3999 = vmatprep.mubr.msk.f32.mxu0 %vm4708_vm2, %v4707_v10 }
0x118e   : > { %v3983_v61 = vpop.f32.mrb[26].mxu0 }
0x118f   : > { %2431 = vperm.xlu0 %4264, %v3983_v61   ;;  %v2415_v40 = vpop.f32.mrb[27].mxu0 }
0x1190   : > { %2426 = vperm.xlu1 %4263, %v2415_v40   ;;  %v1880_v40 = vadd.f32 1e-05, %v5420_v3  ;;  %v2846_v3 = vrot.slane %v5374_v20, %v1575_v0 }
0x120e   : > { %v2432_v62 = vpop.permute.xlu0 %2431 }
0x120f   : > { %v2435_v63 = vsub.f32 %v2342_v60, %v2432_v62  ;;  %v2427_v2 = vpop.permute.xlu1 %2426 }
0x1210   : > { %v2434_v5 = vsub.f32 %v2341_v32, %v2427_v2  ;;  %v1906_v32 = vrot.slane %v5374_v20, %v5401_v53  ;;  %v4292_v2 = vld [vmem:[%s728_s13 + $0x8] sm:$0xff]  }
0x1211   : > { %v2437_v7 = vmul.f32 %v2435_v63, %v2435_v63 }
0x1212   : > { %v2436_v6 = vmul.f32 %v2434_v5, %v2434_v5 }
0x1214   : > { %3992 = vmatprep.mubr.msk.f32.mxu1 %vm1001_vm3, %v2436_v6 }
0x1215   : > { %3993 = vmatmul.mubr.msk.f32.vlgmr.msra.gmra.mrb[18].mxu1 %vm1001_vm3, %v2437_v7 }
0x1216   : > { %4018 = vmatprep.mubr.msk.f32.mxu1 %vm4708_vm2, %v4707_v10  ;;  %4123 = vmatpush3.bf16.msra.mxu1 %v4711_v26 }
0x1217   : > { %4124 = vmatprep.subr.bf16.mxu1 %v4714_v19 }
0x121a   : > { %4125 = vmatpush3.bf16.msra.mxu1 %v4711_v26 }
0x121b   : > { %4032 = vmatprep.subr.bf16.mxu1 %v4707_v10 }
0x12e8   : > { %v3994_v8 = vpop.f32.mrb[18].mxu1 }
0x12e9   : > { %v2516_v11 = vadd.f32 1e-05, %v3994_v8  ;;  %v2510_v12 = vpop.f32.mrb[19].mxu1 }
0x12ea   : > { %v2511_v13 = vadd.f32 1e-05, %v2510_v12 }
0x12eb   : > { %4327 = vrsqrt.f32 %v2516_v11 }
0x12ec   : > { %4329 = vrsqrt.f32 %v2511_v13 }
0x12ed   : > { %4331 = vrsqrt.f32 %v1875_v42 }
0x12f5   : > { %v4328_v16 = vpop.eup %4327 }
0x12f6   : > { %v4330_v18 = vpop.eup %4329  ;;  %2528 = vperm.xlu0 %4264, %v4328_v16  }
0x12f7   : > { %2523 = vperm.xlu1 %4263, %v4330_v18   ;;  %v4332_v33 = vpop.eup %4331 }
0x1375   : > { %v2529_v34 = vpop.permute.xlu0 %2528 }
0x1376   : > { %v2532_v37 = vmul.f32 %v2529_v34, %v2435_v63  ;;  %v2524_v38 = vpop.permute.xlu1 %2523 }
0x1377   : > { %v2531_v24 = vmul.f32 %v2524_v38, %v2434_v5  ;;  %v869_v5 = vld [vmem:[%s5193_s9 + $0x10] sm:$0xff] }
0x1378   : > { %v2538_v27 = vmul.f32 %v2536_v28, %v2532_v37  ;;  %v2851_v7 = vrot.slane %v869_v5, %v5255_v30 }
0x1379   : > { %v2537_v21 = vmul.f32 %v2536_v28, %v2531_v24 }
0x137a   : > { %v5471_v43 = vadd.f32 %v2542_v35, %v2538_v27 }
0x137b   : > { %v5473_v44 = vadd.f32 %v2542_v35, %v2537_v21 }
0x137d   : > { %v4120_v45 = vpack.c.bf16 %v5471_v43, %v5473_v44 }
0x137f   : > { %4121 = vmatpush3.bf16.msra.mxu0 %v4120_v45 }
0x1380   : > { %4002 = vmatprep.subr.bf16.mxu0 %v4707_v10 }
0x1382   : > { %4000 = vmatmul.mubr.msk.f32.vlgmr.msra.gmra.mrb[28].mxu0 %vm878_vm1, %v2545_v41 }
0x1383   : > { %4003 = vmatpush3.bf16.msra.mxu0 %v4289_v46  ;;  %4006 = vmatprep.mubr.msk.bf16.mxu0 %vm4708_vm2, %v4707_v10 }
0x1384   : > { %4004 = vmatprep.subr.bf16.mxu0 %v4707_v10 }
0x1387   : > { %4005 = vmatpush3.bf16.msra.mxu0 %v4290_v17 }
0x1388   : > { %4126 = vmatprep.subr.bf16.mxu0 %v4714_v19 }
0x1455   : > { %v2615_v47 = vpop.f32.mrb[28].mxu0 }
0x1456   : > { %v2623_v48 = vpack.c.bf16 %v2615_v47, %v2615_v47  ;;  %v4001_v49 = vpop.f32.mrb[29].mxu0 }
0x1458   : > { %4007 = vmatmul.mubr.msk.bf16.vlgmr.msra.gmra.mrb[32].mxu0 %vm1001_vm3, %v2623_v48 }
0x1459   : > { %4127 = vmatpush3.bf16.msra.mxu0 %v4711_v26  ;;  %4029 = vmatprep.mubr.msk.f32.mxu0 %vm4708_vm2, %v4707_v10 }
0x145a   : > { %4128 = vmatprep.subr.bf16.mxu0 %v4714_v19 }
0x145d   : > { %4129 = vmatpush3.bf16.msra.mxu0 %v4711_v26 }
0x152b   : > { %v2677_v36 = vpop.f32.mrb[32].mxu0 }
0x152c   : > { %v2678_v22 = vadd.f32 %v2677_v36, %v2627_v50  ;;  %v4008_v23 = vpop.f32.mrb[33].mxu0 }
0x152d   : > { %v2680_v25 = vpop.f32.mrb[34].mxu0 }
0x152e   : > { %v4009_v52 = vpop.f32.mrb[35].mxu0  ;;  %4019 = vmatmul.mubr.msk.f32.vlgmr.msra.gmra.mrb[24].mxu1 %vm1001_vm3, %v2678_v22 }
0x152f   : > { %4036 = vmatprep.mubr.msk.bf16.mxu1 %vm4708_vm2, %v4707_v10 }
0x1601   : > { %v2752_v15 = vpop.f32.mrb[24].mxu1 }
0x1602   : > { %2758 = vperm.xlu1 %4263, %v2752_v15   ;;  %v4020_v26 = vpop.f32.mrb[25].mxu1  ;;  %v2950_v15 = vld [vmem:[%s5687_s12] sm:$0xff] }
0x1603   : > { %v4293_v26 = vld [vmem:[%s737_s4] sm:$0xff]  }
0x1606   : > { %1887 = vperm.xlu1 %4263, %v4332_v33  }
0x1681   : > { %v2759_v51 = vpop.permute.xlu1 %2758 }
0x1682   : > { %v2761_v1 = vsub.f32 %v2678_v22, %v2759_v51 }
0x1684   : > { %v2762_v54 = vmul.f32 %v2761_v1, %v2761_v1 }
0x1685   : > { %v1888_v56 = vpop.permute.xlu1 %1887 }
0x1686   : > { %v1895_v57 = vmul.f32 %v1888_v56, %v5405_v55  ;;  %4030 = vmatmul.mubr.msk.f32.vlgmr.msra.gmra.mrb[30].mxu0 %vm1001_vm3, %v2762_v54  ;;  %v4291_v55 = vld [vmem:[%s728_s13] sm:$0xff]  }
0x1687   : > { %4033 = vmatpush3.bf16.msra.mxu1 %v4291_v55  ;;  %4042 = vmatprep.mubr.msk.f32.mxu0 %vm2952_vm12, %v2950_v15 }
0x1688   : > { %v1901_v4 = vmul.f32 %v1900_v14, %v1895_v57  ;;  %4034 = vmatprep.subr.bf16.mxu1 %v4707_v10 }
0x168a   : > { %v1907_v58 = vadd.f32 %v1906_v32, %v1901_v4 }
0x168b   : > { %4035 = vmatpush3.bf16.msra.mxu1 %v4292_v2  ;;  %v3042_v2 = vld [vmem:[#allocation4 + $0x8] sm:$0xff] }
0x168c   : > { %1909 = vst.msk [vmem:[#allocation3] sm:$0xff] %vm1001_vm3, %v1907_v58  ;;  %4045 = vmatprep.subr.bf16.mxu1 %v4707_v10  ;;  %v2951_v58 = vld [vmem:[%s5687_s12 + $0x8] sm:$0xff] }
0x1759   : > { %v2832_v59 = vpop.f32.mrb[30].mxu0 }
0x175a   : > { %v2833_v60 = vadd.f32 1e-05, %v2832_v59  ;;  %v4031_v61 = vpop.f32.mrb[31].mxu0 }
0x175c   : > { %4333 = vrsqrt.f32 %v2833_v60 }
0x175d   : > { %4335 = vrsqrt.f32 %v1880_v40 }
0x1766   : > { %v4334_v62 = vpop.eup %4333 }
0x1767   : > { %2839 = vperm.xlu0 %4264, %v4334_v62   ;;  %v4336_v63 = vpop.eup %4335 }
0x176b   : > { %1892 = vperm.xlu0 %4264, %v4336_v63   ;;  %v3041_v63 = vld [vmem:[#allocation4] sm:$0xff] }
0x17e6   : > { %v2840_v6 = vpop.permute.xlu0 %2839 }
0x17e7   : > { %v2842_v8 = vmul.f32 %v2840_v6, %v2761_v1 }
0x17e9   : > { %v2847_v11 = vmul.f32 %v2846_v3, %v2842_v8 }
0x17ea   : > { %v1893_v12 = vpop.permute.xlu0 %1892 }
0x17eb   : > { %v2852_v13 = vadd.f32 %v2851_v7, %v2847_v11  ;;  %v1896_v16 = vmul.f32 %v1893_v12, %v5403_v39  ;;  %v4715_v12 = vmov (!%p3672_p10), 0.03125|0.03125  }
0x17ed   : > { %v2854_v18 = vmul.f32 0.70710677, %v2852_v13  ;;  %v1902_v19 = vmul.f32 %v1900_v14, %v1896_v16  ;;  %v2853_v23 = vmul.f32 0.5, %v2852_v13 }
0x17ef   : > { %v2857_v28 = vand.u32 2147483647, %v2854_v18  ;;  %v1908_v34 = vadd.f32 %v1906_v32, %v1902_v19  ;;  %vm2855_vm11 = vcmp.ge.f32.partialorder %v2854_v18, 0.0 }
0x17f0   : > { %v2856_v36 = vsel %vm2855_vm11, 1.0, %v4712_v9  ;;  %v2888_v9 = vrot.slane %v869_v5, %v5258_v31 }
0x17f1   : > { %v2858_v35 = vmul.f32 0.3275911, %v2857_v28  ;;  %1910 = vst.msk [vmem:[#allocation3 + $0x8] sm:$0xff] %vm1001_vm3, %v1908_v34  ;;  %v2871_v29 = vsub.f32 0.0, %v2857_v28  ;;  %v4716_v34 = vmov (!%p3672_p10), 0  }
0x17f2   : > { %4347 = vset.pattern.permute.xlu0 (!%p3672_p10), %v4716_v34  ;;  %4348 = vset.pattern.permute.xlu1 (!%p3672_p10), %v4716_v34 }
0x17f3   : > { %v2859_v37 = vadd.f32 1.0, %v2858_v35  ;;  %v2872_v20 = vmul.f32 %v2871_v29, %v2857_v28 }
0x17f5   : > { %4337 = vrcp.f32 %v2859_v37  ;;  %v2873_v27 = vmul.f32 1.442695, %v2872_v20 }
0x17f7   : > { %4339 = vpow2.f32 %v2873_v27 }
0x17ff   : > { %v4338_v0 = vpop.eup %4337 }
0x1800   : > { %v2862_v38 = vmul.f32 1.0614054, %v4338_v0 }
0x1801   : > { %v4340_v48 = vpop.eup %4339 }
0x1802   : > { %v2863_v24 = vadd.f32 -1.4531521, %v2862_v38 }
0x1804   : > { %v2864_v21 = vmul.f32 %v4338_v0, %v2863_v24 }
0x1806   : > { %v2865_v45 = vadd.f32 1.4214138, %v2864_v21 }
0x1808   : > { %v2866_v41 = vmul.f32 %v4338_v0, %v2865_v45 }
0x180a   : > { %v2867_v39 = vadd.f32 -0.28449672, %v2866_v41 }
0x180c   : > { %v2868_v46 = vmul.f32 %v4338_v0, %v2867_v39 }
0x180e   : > { %v2869_v17 = vadd.f32 0.2548296, %v2868_v46 }
0x1810   : > { %v2870_v47 = vmul.f32 %v4338_v0, %v2869_v17 }
0x1812   : > { %v2875_v49 = vmul.f32 %v4340_v48, %v2870_v47 }
0x1814   : > { %v2876_v50 = vsub.f32 1.0, %v2875_v49 }
0x1816   : > { %v2877_v22 = vmul.f32 %v2876_v50, %v2856_v36 }
0x1818   : > { %v2878_v25 = vadd.f32 1.0, %v2877_v22 }
0x181a   : > { %v2879_v52 = vmul.f32 %v2878_v25, %v2853_v23 }
0x181c   : > { %v2884_v42 = vpack.c.bf16 %v2879_v52, %v2879_v52 }
0x181e   : > { %4037 = vmatmul.mubr.msk.bf16.vlgmr.msra.gmra.mrb[28].mxu1 %vm1001_vm3, %v2884_v42 }
0x181f   : > { %4049 = vmatprep.mubr.msk.bf16.mxu1 %vm4708_vm2, %v4707_v10  ;;  %4046 = vmatpush3.bf16.msra.mxu1 %v4293_v26 }
0x1820   : > { %4047 = vmatprep.subr.bf16.mxu1 %v4707_v10  ;;  %v4294_v10 = vld [vmem:[%s737_s4 + $0x8] sm:$0xff]  }
0x1823   : > { %4048 = vmatpush3.bf16.msra.mxu1 %v4294_v10 }
0x1824   : > { %4134 = vmatprep.subr.bf16.mxu1 (!%p3672_p10), %v4715_v12 }
0x18f1   : > { %v2938_v33 = vpop.f32.mrb[28].mxu1 }
0x18f2   : > { %v2939_v51 = vadd.f32 %v2938_v33, %v2888_v9  ;;  %v4038_v1 = vpop.f32.mrb[29].mxu1 }
0x18f3   : > { %v2941_v54 = vpop.f32.mrb[30].mxu1 }
0x18f4   : > { %v3665_v14 = vmul.f32 -1.442695, %v2939_v51  ;;  %v4039_v56 = vpop.f32.mrb[31].mxu1 }
0x18f6   : > { %4341 = vpow2.f32 %v3665_v14 }
0x1900   : > { %v4342_v32 = vpop.eup %4341 }
0x1901   : > { %v2947_v57 = vadd.f32 1.0, %v4342_v32 }
0x1903   : > { %4343 = vrcp.f32 %v2947_v57 }
0x190d   : > { %v4344_v4 = vpop.eup %4343 }
0x190e   : > { %4040 = vmatprep.subr.msk.mxu0 %vm1229_vm6, %v4344_v4 }
0x190f   : > { %4041 = vmatpush3.msk.msra.mxu0 %vm1229_vm6, %v4344_v4 }
0x1910   : > { %4043 = vmatmul.mubr.msk.f32.vlgmr.msra.gmra.mrb[36].mxu0 %vm2952_vm12, %v2951_v58  ;;  %4130 = vmatprep.subr.bf16.mxu0 (!%p3672_p10), %v4715_v12 }
0x1911   : > { %4131 = vmatpush3.bf16.msra.mxu0 (!%p3672_p10), %v4715_v12 }
0x1912   : > { %4132 = vmatprep.subr.bf16.mxu0 (!%p3672_p10), %v4715_v12 }
0x1915   : > { %4133 = vmatpush3.bf16.msra.mxu0 (!%p3672_p10), %v4715_v12 }
0x19e3   : > { %v4044_v59 = vpop.f32.mrb[36].mxu0 }
0x19e4   : > { %v3038_v60 = vmul.f32 %v4044_v59, %v5471_v43  ;;  %v3028_v61 = vpop.f32.mrb[37].mxu0 }
0x19e5   : > { %v3037_v40 = vmul.f32 %v3028_v61, %v5473_v44  ;;  %v3112_v44 = vld [vmem:[#allocation11] sm:$0x7] (!%p3672_p10) }
0x19e6   : > { %3040 = vst.msk [vmem:[#allocation2 + $0x8] sm:$0xff] %vm1001_vm3, %v3038_v60  ;;  %v3120_v16 = vrot.slane (!%p3672_p10), %v3112_v44, %v5255_v30  ;;  %v3316_v17 = vrot.slane (!%p3672_p10), %v3112_v44, %v5258_v31  ;;  %v3322_v48 = vrot.slane (!%p3672_p10), %v3112_v44, %v5401_v53 }
0x19e7   : > { %3039 = vst.msk [vmem:[#allocation2] sm:$0xff] %vm1001_vm3, %v3037_v40  ;;  %v3047_v62 = vpack.c.bf16 %v3038_v60, %v3037_v40 }
0x19e9   : > { %4050 = vmatmul.mubr.msk.bf16.vlgmr.msra.gmra.mrb[32].mxu1 %vm1001_vm3, %v3047_v62 }
0x19ea   : > { %4135 = vmatpush3.bf16.msra.mxu1 (!%p3672_p10), %v4715_v12 }
0x19eb   : > { %4136 = vmatprep.subr.bf16.mxu1 (!%p3672_p10), %v4715_v12 }
0x19ee   : > { %4137 = vmatpush3.bf16.msra.mxu1 (!%p3672_p10), %v4715_v12 }
0x1abb   : > { %3111 = sbr.rel (%p3672_p10) target bundleno = 7575 (0x1d97), region = 132 }
0x1abc   : > { %v3097_v55 = vpop.f32.mrb[32].mxu1 }
0x1abd   : > { %v3104_v5 = vadd.f32 %v3097_v55, %v3041_v63  ;;  %v4051_v3 = vpop.f32.mrb[33].mxu1 }
0x1abe   : > { %v3100_v6 = vpop.f32.mrb[34].mxu1 }
0x1abf   : > { %3106 = vst.msk [vmem:[#allocation4] sm:$0xff] %vm1001_vm3, %v3104_v5  ;;  %v3105_v7 = vadd.f32 %v3100_v6, %v3042_v2  ;;  %v4052_v43 = vpop.f32.mrb[35].mxu1 }
0x1ac1   : > { %3107 = vst.msk [vmem:[#allocation4 + $0x8] sm:$0xff] %vm1001_vm3, %v3105_v7 }
0x1ac6   : > { %v3113_v8 = vld [vmem:[#allocation4] sm:$0xff] }
0x1ac7   : > { %v3115_v13 = vadd.f32 %v3113_v8, %v3037_v40 }
0x1ac8   : > { %v3114_v11 = vld [vmem:[#allocation4 + $0x8] sm:$0xff] }
0x1ac9   : > { %v3116_v18 = vadd.f32 %v3114_v11, %v3038_v60  ;;  %v3121_v19 = vadd.f32 %v3120_v16, %v3115_v13 }
0x1acb   : > { %4061 = vmatprep.mubr.msk.f32.mxu0 %vm1001_vm3, %v3121_v19  ;;  %v3122_v28 = vadd.f32 %v3120_v16, %v3116_v18 }
0x1acd   : > { %4062 = vmatmul.mubr.msk.f32.vlgmr.msra.gmra.mrb[0].mxu0 %vm1001_vm3, %v3122_v28 }
0x1ba0   : > { %v4063_v35 = vpop.f32.mrb[0].mxu0 }
0x1ba1   : > { %v3195_v37 = vpop.f32.mrb[1].mxu0 }
0x1ba2   : > { %3206 = vperm.xlu0 %4347, %v3195_v37  }
0x1ba6   : > { %3211 = vperm.xlu0 %4347, %v4063_v35  }
0x1c21   : > { %v3207_v30 = vpop.permute.xlu0 %3206 }
0x1c22   : > { %v3214_v29 = vsub.f32 %v3121_v19, %v3207_v30 }
0x1c24   : > { %v3216_v0 = vmul.f32 %v3214_v29, %v3214_v29 }
0x1c25   : > { %v3212_v20 = vpop.permute.xlu0 %3211 }
0x1c26   : > { %v3215_v38 = vsub.f32 %v3122_v28, %v3212_v20  ;;  %4072 = vmatprep.mubr.msk.f32.mxu1 %vm1001_vm3, %v3216_v0 }
0x1c28   : > { %v3217_v24 = vmul.f32 %v3215_v38, %v3215_v38 }
0x1c2a   : > { %4073 = vmatmul.mubr.msk.f32.vlgmr.msra.gmra.mrb[0].mxu1 %vm1001_vm3, %v3217_v24 }
0x1cfd   : > { %v4074_v27 = vpop.f32.mrb[0].mxu1 }
0x1cfe   : > { %v3290_v21 = vpop.f32.mrb[1].mxu1  ;;  %v3296_v41 = vadd.f32 1e-05, %v4074_v27 }
0x1cff   : > { %v3291_v45 = vadd.f32 1e-05, %v3290_v21 }
0x1d01   : > { %4349 = vrsqrt.f32 %v3291_v45 }
0x1d02   : > { %4351 = vrsqrt.f32 %v3296_v41 }
0x1d0b   : > { %v4350_v39 = vpop.eup %4349 }
0x1d0c   : > { %3303 = vperm.xlu1 %4348, %v4350_v39   ;;  %v4352_v46 = vpop.eup %4351 }
0x1d10   : > { %3308 = vperm.xlu1 %4348, %v4352_v46  }
0x1d8b   : > { %v3304_v47 = vpop.permute.xlu1 %3303 }
0x1d8c   : > { %v3311_v49 = vmul.f32 %v3304_v47, %v3214_v29 }
0x1d8e   : > { %v3317_v50 = vmul.f32 %v3316_v17, %v3311_v49 }
0x1d8f   : > { %v3309_v36 = vpop.permute.xlu1 %3308 }
0x1d90   : > { %v3323_v22 = vadd.f32 %v3322_v48, %v3317_v50  ;;  %v3312_v23 = vmul.f32 %v3309_v36, %v3215_v38 }
0x1d92   : > { %3325 = vst.msk [vmem:[#allocation18] sm:$0xff] %vm1001_vm3, %v3323_v22  ;;  %v3318_v25 = vmul.f32 %v3316_v17, %v3312_v23 }
0x1d94   : > { %v3324_v52 = vadd.f32 %v3322_v48, %v3318_v25 }
0x1d96   : > { %3326 = vst.msk [vmem:[#allocation18 + $0x8] sm:$0xff] %vm1001_vm3, %v3324_v52 }
0x1d97 PF: > { %p4207_p6 = scmp.eq.s32.totalorder %s4829_s28, 1  ;;  %s4717_s3 = smov [#allocation18]  }
0x1d98   : > { %s3333_s23 = sshll.u32 %s4717_s3, 4  ;;  %s3334_s23 = int_to_ptr.vmem [resolvable:$true] %s3333_s23 }
0x1d99   : > { %s4615_s13 = scalar_lea.vmem %s3334_s23, 256  ;;  %p4622_p0 = scmp.lt.s32.totalorder %s3334_s23, %s3334_s23 }
0x1d9a   : > { %p4616_p4 = scmp.ne.s32.totalorder %s3334_s23, %s4615_s13  ;;  %p4623_p3 = scmp.lt.s32.totalorder %s4615_s13, %s4615_s13 }
0x1d9c   : > { %p4617_p7 = pnand %p4616_p4, %p4207_p6  ;;  %p4624_p11 = por %p4623_p3, %p4622_p0 }
0x1d9e   : > { %p4618_p13 = pneg %p4617_p7 }
0x1da0   : > { %p4625_p5 = pnand %p4624_p11, %p4618_p13 }
0x1da2   : > { %4628 = shalt.err (!%p4625_p5)
}
0x1da3   : > { %s5688_s27 = sld [smem:[#allocation39_spill]] }
0x1da9   : > { %s5689_s19 = smov %s5688_s27  ;;  %s4629_s21 = scalar_lea.hbm %s5688_s27, 256 }
0x1daa   : > { %p4630_p9 = scmp.ne.s32.totalorder %s5689_s19, %s4629_s21  ;;  %p4635_p12 = scmp.lt.u32.totalorder %s4629_s21, %s5689_s19 }
0x1dac   : > { %p4631_p8 = pnand %p4630_p9, %p4207_p6 }
0x1dae   : > { %p4632_p2 = pneg %p4631_p8 }
0x1db0   : > { %p4637_p1 = pnand %p4635_p12, %p4632_p2 }
0x1db2   : > { %4640 = shalt.err (!%p4637_p1)
}
0x1db3   : > { %s4718_s17 = smov 128   ;;  %s4719_s7 = smov 8  }
0x1db4   : > { %4166 = dma.vmem_to_hbm [thread:$0]  (%p4207_p6), %s3334_s23, 256, %s5689_s19, [#allocation7], %s4718_s17, %s4718_s17, %s4719_s7  }
0x1db5   : > { %4674 = dma.done.wait (%p4207_p6), [#allocation7], 256  }
0x1db6   : > { %4676 = vsyncadd (%p4207_p6), [#allocation7], 4294967040 }
0x1db7 PF: > { %s5690_s27 = sld [smem:[#allocation25_spill]]  ;;  %s5691_s29 = sld [smem:[#allocation24_spill]] }
0x1db8   : > { %s5692_s26 = sld [smem:[#allocation26_spill]]  ;;  %s5693_s24 = smov %s4683_s25 }
0x1dbd   : > { %p28_p10 = scmp.ge.s32.totalorder %s5690_s27, 4   ;;  %s5694_s25 = smov %s5691_s29 }
0x1dbf   :  { %30 = sbr.rel (!%p28_p10) target bundleno = 18 (0x12), region = 207 }
0x1dc6   :  { %3349 = vsyncpa [#allocation6], 1 }
0x1dc7   :  { %3351 = vsyncpa [#allocation6 + $0x1], 1 }
0x1dc8   :  { %3352 = vsyncpa [#allocation9], 1 }
0x1dc9   :  { %3353 = vsyncpa [#allocation12], 1 }
0x1dca   :  { %3354 = vsyncpa [#allocation7], 1 }
0x1dcb   :  { %3356 = vsyncpa [#allocation7 + $0x1], 1 }

</bundles_post_ra>
